<compile_context>
chip_gen: v6e
topology: v6e:2x2x1
jax: 0.10.0
libtpu: 0.0.40
codegen_flags: <defaults>
</compile_context>

<pallas_src>
import functools

import jax
import jax.numpy as jnp
from jax.experimental import pallas as pl
from jax.experimental.pallas import tpu as pltpu

GIN_EPS = 0.0    # torch_geometric GINConv default eps
BN_EPS = 1e-5    # nn.BatchNorm1d default eps
LANE = 128       # TPU lane width; all feature axes padded to this


def _vmem_limit_bytes():
    """Scoped-VMEM limit ~= 3/4 of physical capacity (generation-aware)."""
    try:
        return int(pltpu.get_tpu_info().vmem_capacity_bytes * 3 // 4)
    except Exception:
        return 48 << 20   # conservative fallback (fits every generation)


VMEM_LIMIT_BYTES = _vmem_limit_bytes()


# ------------------------------- fused kernel -------------------------------

def fused_gin_kernel(a_ref, p_ref, x_ref, w_ref, b_ref, out_ref, *, n_convs):
    """Entire GINConcat forward (eval mode); all intermediates stay in VMEM/vregs.

    Weight slab layout (w_ref, [3*n_convs+2, 128, 128]):
      [k]               conv-k MLP Linear1 (inner BN folded)
      [n_convs + k]     conv-k MLP Linear2 (outer BN folded)
      [2*n_convs + j]   head Linear1 rows of concat segment j   (j = 0..n_convs)
      [3*n_convs + 1]   head Linear2
    Bias slab layout (b_ref, [2*n_convs+2, 1, 128]):
      [k] conv-k b1, [n_convs+k] conv-k b2, [2*n_convs] head b1, [2*n_convs+1] head b2
    """
    f32 = jnp.float32
    A = a_ref[...].astype(f32)     # [N, N]  bf16 in HBM (exact ints), self-loop folded
    P = p_ref[...].astype(f32)     # [G, N]  bf16 in HBM (exact one-hot)
    x = x_ref[...]                 # [N, 128] node features, zero-padded lanes

    hw1_off = 2 * n_convs
    hw2_idx = 3 * n_convs + 1
    hb1_idx = 2 * n_convs
    hb2_idx = 2 * n_convs + 1

    # Head Linear-1 accumulated per pooled segment (replaces jnp.concatenate):
    #   lin1(concat(h_out)) == sum_k (P @ x_k) @ head_w1_chunk_k
    acc = b_ref[hb1_idx] + jnp.dot(
        jnp.dot(P, x, preferred_element_type=f32),
        w_ref[hw1_off], preferred_element_type=f32)                 # [G, 128]

    for k in range(n_convs):                                        # statically unrolled
        # GIN aggregation: (1+eps)*I already folded into A -> single matmul.
        agg = jnp.dot(A, x, preferred_element_type=f32)
        # MLP Linear1 (inner BatchNorm folded in) -> ReLU
        h = jnp.maximum(
            jnp.dot(agg, w_ref[k], preferred_element_type=f32) + b_ref[k], 0.0)
        # MLP Linear2 (outer BatchNorm folded in) -> ReLU
        x = jnp.maximum(
            jnp.dot(h, w_ref[n_convs + k], preferred_element_type=f32)
            + b_ref[n_convs + k], 0.0)
        # global_add_pool followed by this layer's slice of head Linear-1
        acc = acc + jnp.dot(
            jnp.dot(P, x, preferred_element_type=f32),
            w_ref[hw1_off + k + 1], preferred_element_type=f32)

    # Head: ReLU -> (dropout = identity in eval) -> Linear2. Lane-dense store.
    h = jnp.maximum(acc, 0.0)
    out_ref[...] = jnp.dot(h, w_ref[hw2_idx],
                           preferred_element_type=f32) + b_ref[hb2_idx]


# --------------------------- parameter preparation ---------------------------

def _pad2(a, rows, cols):
    """Zero-pad a 2-D array up to [rows, cols] (float32)."""
    out = jnp.zeros((rows, cols), jnp.float32)
    return out.at[:a.shape[0], :a.shape[1]].set(a.astype(jnp.float32))


def prepare_fused_params(params, n_node_features, n_hidden, n_convs):
    """Fold eval-mode BNs into Linears, pad to 128 lanes, coalesce into 2 slabs."""
    n_w = 3 * n_convs + 2
    n_b = 2 * n_convs + 2
    W = [None] * n_w
    B = [None] * n_b
    for k, cp in enumerate(params["convs"]):
        w1f = cp["w1"] * cp["s1"]                 # inner BN folded into Linear1
        b1f = cp["b1"] * cp["s1"] + cp["t1"]
        w2f = cp["w2"] * cp["so"]                 # outer BN folded into Linear2
        b2f = cp["b2"] * cp["so"] + cp["to"]
        W[k] = _pad2(w1f, LANE, LANE)
        W[n_convs + k] = _pad2(w2f, LANE, LANE)
        B[k] = _pad2(b1f, 1, LANE)
        B[n_convs + k] = _pad2(b2f, 1, LANE)

    # Split head Linear-1 rows by concat segment (F, H, H, ...), pad each chunk.
    seg_sizes = [n_node_features] + [n_hidden] * n_convs
    off = 0
    for j, s in enumerate(seg_sizes):
        W[2 * n_convs + j] = _pad2(params["head_w1"][off:off + s, :], LANE, LANE)
        off += s
    W[3 * n_convs + 1] = _pad2(params["head_w2"], LANE, LANE)   # only [:H, 0] non-zero
    B[2 * n_convs] = _pad2(params["head_b1"], 1, LANE)
    B[2 * n_convs + 1] = _pad2(params["head_b2"], 1, LANE)      # only [0, 0] non-zero

    return jnp.stack(W), jnp.stack(B)          # [3n+2,128,128], [2n+2,1,128]


# --------------------------------- wrapper -----------------------------------

def gin_concat_forward(x, a_hat, pool, W, B, *, n_convs):
    N = x.shape[0]
    G = pool.shape[0]
    x_p = _pad2(x, N, LANE)                    # lane-dense node features

    # Advisory cost estimate so XLA schedules surrounding work around the call.
    def mm(m, k, n):
        return 2 * m * k * n
    flops = (mm(G, N, LANE) + mm(G, LANE, LANE)
             + n_convs * (mm(N, N, LANE) + 2 * mm(N, LANE, LANE)
                          + mm(G, N, LANE) + mm(G, LANE, LANE))
             + mm(G, LANE, LANE))
    bytes_accessed = (a_hat.size * a_hat.dtype.itemsize
                      + pool.size * pool.dtype.itemsize
                      + x_p.size * 4 + W.size * 4 + B.size * 4
                      + G * LANE * 4)

    kernel = functools.partial(fused_gin_kernel, n_convs=n_convs)
    vmem = pl.BlockSpec(memory_space=pltpu.MemorySpace.VMEM)
    out = pl.pallas_call(
        kernel,
        out_shape=jax.ShapeDtypeStruct((G, LANE), jnp.float32),
        in_specs=[vmem] * 5,
        out_specs=vmem,
        compiler_params=pltpu.CompilerParams(vmem_limit_bytes=VMEM_LIMIT_BYTES),
        cost_estimate=pl.CostEstimate(flops=flops, transcendentals=0,
                                      bytes_accessed=bytes_accessed),
    )(a_hat, pool, x_p, W, B)
    return out[:, 0]                           # torch.flatten(h)


# --------------------------- parameter initialization -----------------------

def _linear_init(key, fan_in, fan_out):
    kw, kb = jax.random.split(key)
    bound = 1.0 / jnp.sqrt(jnp.float32(fan_in))
    w = jax.random.uniform(kw, (fan_in, fan_out), jnp.float32, -bound, bound)
    b = jax.random.uniform(kb, (1, fan_out), jnp.float32, -bound, bound)
    return w, b


def _bn_init(key, dim):
    kg, kb, km, kv = jax.random.split(key, 4)
    gamma = 1.0 + 0.1 * jax.random.normal(kg, (1, dim), jnp.float32)
    beta = 0.1 * jax.random.normal(kb, (1, dim), jnp.float32)
    mean = 0.1 * jax.random.normal(km, (1, dim), jnp.float32)
    var = 0.5 + jax.random.uniform(kv, (1, dim), jnp.float32)
    scale = gamma / jnp.sqrt(var + BN_EPS)
    shift = beta - mean * scale
    return scale, shift


def init_params(key, n_node_features=5, n_hidden=32, n_convs=3,
                n_hidden_linear=32):
    keys = jax.random.split(key, 4 * n_convs + 2)
    convs = []
    for k in range(n_convs):
        in_dim = n_node_features if k == 0 else n_hidden
        w1, b1 = _linear_init(keys[4 * k + 0], in_dim, n_hidden)
        s1, t1 = _bn_init(keys[4 * k + 1], n_hidden)          # MLP's inner BN (eval)
        w2, b2 = _linear_init(keys[4 * k + 2], n_hidden, n_hidden)
        so, to = _bn_init(keys[4 * k + 3], n_hidden)          # outer BN (eval)
        convs.append(dict(w1=w1, b1=b1, s1=s1, t1=t1,
                          w2=w2, b2=b2, so=so, to=to))
    lin_dim = n_hidden * n_convs + n_node_features
    hw1, hb1 = _linear_init(keys[-2], lin_dim, n_hidden_linear)
    hw2, hb2 = _linear_init(keys[-1], n_hidden_linear, 1)
    return dict(convs=convs, head_w1=hw1, head_b1=hb1,
                head_w2=hw2, head_b2=hb2)


# ------------------------------ pure-JAX reference ---------------------------

def ref_forward(x, A, P, params):
    h_out = [P @ x]
    for cp in params["convs"]:
        agg = A @ x + (1.0 + GIN_EPS) * x
        h = agg @ cp["w1"] + cp["b1"]
        h = jnp.maximum(h * cp["s1"] + cp["t1"], 0.0)
        h = h @ cp["w2"] + cp["b2"]
        x = jnp.maximum(h * cp["so"] + cp["to"], 0.0)
        h_out.append(P @ x)
    h = jnp.concatenate(h_out, axis=1)
    h = jnp.maximum(h @ params["head_w1"] + params["head_b1"], 0.0)
    h = h @ params["head_w2"] + params["head_b2"]
    return h.reshape(-1)


# ----------------------------------- main ------------------------------------

if __name__ == "__main__":
    key = jax.random.PRNGKey(0)
    k_x, k_p = jax.random.split(key)

    # Small but MXU-friendly batch: 8 graphs x 16 nodes -> N = 128 rows per matmul
    # (fills the systolic-array row dimension); G = 8 keeps the output slab
    # sublane/lane aligned.
    G, nodes_per_graph, F = 8, 16, 5
    N = G * nodes_per_graph
    n_hidden, n_convs, n_hidden_linear = 32, 3, 32

    x = jax.random.normal(k_x, (N, F), dtype=jnp.float32)
    batch = jnp.repeat(jnp.arange(G, dtype=jnp.int32), nodes_per_graph)

    # edge_index: directed ring (both directions) inside each graph.
    node = jnp.arange(N, dtype=jnp.int32)
    g_id = node // nodes_per_graph
    nxt = g_id * nodes_per_graph + (node % nodes_per_graph + 1) % nodes_per_graph
    src = jnp.concatenate([node, nxt])
    tgt = jnp.concatenate([nxt, node])

    # Dense adjacency (rows = message targets) and graph-pooling matrix.
    A = jnp.zeros((N, N), jnp.float32).at[tgt, src].add(1.0)
    P = (batch[None, :] == jnp.arange(G)[:, None]).astype(jnp.float32)

    # Fold GIN self-term into the adjacency and ship A/P as bf16: all entries are
    # small integers / one-hot, so the cast is exact while halving O(N^2) traffic.
    A_hat = (A + (1.0 + GIN_EPS) * jnp.eye(N, dtype=jnp.float32)).astype(jnp.bfloat16)
    P_b = P.astype(jnp.bfloat16)

    params = init_params(k_p, n_node_features=F, n_hidden=n_hidden,
                         n_convs=n_convs, n_hidden_linear=n_hidden_linear)
    W, B = prepare_fused_params(params, F, n_hidden, n_convs)

    fwd = jax.jit(functools.partial(gin_concat_forward, n_convs=n_convs))
    out = jax.block_until_ready(fwd(x, A_hat, P_b, W, B))

    ref = ref_forward(x, A, P, params)
    assert out.shape == (G,)
    assert jnp.allclose(out, ref, atol=1e-4, rtol=1e-4), (out, ref)
    print("KERNEL_OK")
</pallas_src>

<mosaic_0001>
module attributes {stable_mosaic.version = 11 : i64} {
  func.func @fused_gin_kernel(%arg0: memref<128x128xbf16, #tpu.memory_space<vmem>>, %arg1: memref<8x128xbf16, #tpu.memory_space<vmem>>, %arg2: memref<128x128xf32, #tpu.memory_space<vmem>>, %arg3: memref<11x128x128xf32, #tpu.memory_space<vmem>>, %arg4: memref<8x1x128xf32, #tpu.memory_space<vmem>>, %arg5: memref<8x128xf32, #tpu.memory_space<vmem>>) attributes {dimension_semantics = [], scalar_prefetch = 0 : i64, scratch_operands = 0 : i64, tpu.core_type = #tpu.core_type<tc>} {
    %c0 = arith.constant 0 : index
    %c0_0 = arith.constant 0 : index
    %0 = vector.load %arg0[%c0, %c0_0] : memref<128x128xbf16, #tpu.memory_space<vmem>>, vector<128x128xbf16>
    %1 = arith.extf %0 : vector<128x128xbf16> to vector<128x128xf32>
    %c0_1 = arith.constant 0 : index
    %c0_2 = arith.constant 0 : index
    %2 = vector.load %arg1[%c0_1, %c0_2] : memref<8x128xbf16, #tpu.memory_space<vmem>>, vector<8x128xbf16>
    %3 = arith.extf %2 : vector<8x128xbf16> to vector<8x128xf32>
    %c0_3 = arith.constant 0 : index
    %c0_4 = arith.constant 0 : index
    %4 = vector.load %arg2[%c0_3, %c0_4] : memref<128x128xf32, #tpu.memory_space<vmem>>, vector<128x128xf32>
    %c6 = arith.constant 6 : index
    %c0_5 = arith.constant 0 : index
    %c0_6 = arith.constant 0 : index
    %5 = vector.load %arg4[%c6, %c0_5, %c0_6] : memref<8x1x128xf32, #tpu.memory_space<vmem>>, vector<1x1x128xf32>
    %6 = vector.shape_cast %5 : vector<1x1x128xf32> to vector<1x128xf32>
    %cst = arith.constant dense<0.000000e+00> : vector<8x128xf32>
    %7 = tpu.matmul %3, %4, %cst {dimension_numbers = #tpu.dot_dimension_numbers<[1], [0], [0], [1], [0, 0, 1, 1], [], []>} : vector<8x128xf32>, vector<128x128xf32>, vector<8x128xf32> -> vector<8x128xf32>
    %c6_7 = arith.constant 6 : index
    %c0_8 = arith.constant 0 : index
    %c0_9 = arith.constant 0 : index
    %8 = vector.load %arg3[%c6_7, %c0_8, %c0_9] : memref<11x128x128xf32, #tpu.memory_space<vmem>>, vector<1x128x128xf32>
    %9 = vector.shape_cast %8 : vector<1x128x128xf32> to vector<128x128xf32>
    %cst_10 = arith.constant dense<0.000000e+00> : vector<8x128xf32>
    %10 = tpu.matmul %7, %9, %cst_10 {dimension_numbers = #tpu.dot_dimension_numbers<[1], [0], [0], [1], [0, 0, 1, 1], [], []>} : vector<8x128xf32>, vector<128x128xf32>, vector<8x128xf32> -> vector<8x128xf32>
    %11 = vector.broadcast %6 : vector<1x128xf32> to vector<8x128xf32>
    %12 = arith.addf %11, %10 : vector<8x128xf32>
    %cst_11 = arith.constant dense<0.000000e+00> : vector<128x128xf32>
    %13 = tpu.matmul %1, %4, %cst_11 {dimension_numbers = #tpu.dot_dimension_numbers<[1], [0], [0], [1], [0, 0, 1, 1], [], []>} : vector<128x128xf32>, vector<128x128xf32>, vector<128x128xf32> -> vector<128x128xf32>
    %c0_12 = arith.constant 0 : index
    %c0_13 = arith.constant 0 : index
    %c0_14 = arith.constant 0 : index
    %14 = vector.load %arg3[%c0_12, %c0_13, %c0_14] : memref<11x128x128xf32, #tpu.memory_space<vmem>>, vector<1x128x128xf32>
    %15 = vector.shape_cast %14 : vector<1x128x128xf32> to vector<128x128xf32>
    %cst_15 = arith.constant dense<0.000000e+00> : vector<128x128xf32>
    %16 = tpu.matmul %13, %15, %cst_15 {dimension_numbers = #tpu.dot_dimension_numbers<[1], [0], [0], [1], [0, 0, 1, 1], [], []>} : vector<128x128xf32>, vector<128x128xf32>, vector<128x128xf32> -> vector<128x128xf32>
    %c0_16 = arith.constant 0 : index
    %c0_17 = arith.constant 0 : index
    %c0_18 = arith.constant 0 : index
    %17 = vector.load %arg4[%c0_16, %c0_17, %c0_18] : memref<8x1x128xf32, #tpu.memory_space<vmem>>, vector<1x1x128xf32>
    %18 = vector.shape_cast %17 : vector<1x1x128xf32> to vector<1x128xf32>
    %19 = vector.broadcast %18 : vector<1x128xf32> to vector<128x128xf32>
    %20 = arith.addf %16, %19 : vector<128x128xf32>
    %cst_19 = arith.constant 0.000000e+00 : f32
    %21 = vector.broadcast %cst_19 : f32 to vector<128x128xf32>
    %22 = arith.maximumf %20, %21 : vector<128x128xf32>
    %c3 = arith.constant 3 : index
    %c0_20 = arith.constant 0 : index
    %c0_21 = arith.constant 0 : index
    %23 = vector.load %arg3[%c3, %c0_20, %c0_21] : memref<11x128x128xf32, #tpu.memory_space<vmem>>, vector<1x128x128xf32>
    %24 = vector.shape_cast %23 : vector<1x128x128xf32> to vector<128x128xf32>
    %cst_22 = arith.constant dense<0.000000e+00> : vector<128x128xf32>
    %25 = tpu.matmul %22, %24, %cst_22 {dimension_numbers = #tpu.dot_dimension_numbers<[1], [0], [0], [1], [0, 0, 1, 1], [], []>} : vector<128x128xf32>, vector<128x128xf32>, vector<128x128xf32> -> vector<128x128xf32>
    %c3_23 = arith.constant 3 : index
    %c0_24 = arith.constant 0 : index
    %c0_25 = arith.constant 0 : index
    %26 = vector.load %arg4[%c3_23, %c0_24, %c0_25] : memref<8x1x128xf32, #tpu.memory_space<vmem>>, vector<1x1x128xf32>
    %27 = vector.shape_cast %26 : vector<1x1x128xf32> to vector<1x128xf32>
    %28 = vector.broadcast %27 : vector<1x128xf32> to vector<128x128xf32>
    %29 = arith.addf %25, %28 : vector<128x128xf32>
    %cst_26 = arith.constant 0.000000e+00 : f32
    %30 = vector.broadcast %cst_26 : f32 to vector<128x128xf32>
    %31 = arith.maximumf %29, %30 : vector<128x128xf32>
    %cst_27 = arith.constant dense<0.000000e+00> : vector<8x128xf32>
    %32 = tpu.matmul %3, %31, %cst_27 {dimension_numbers = #tpu.dot_dimension_numbers<[1], [0], [0], [1], [0, 0, 1, 1], [], []>} : vector<8x128xf32>, vector<128x128xf32>, vector<8x128xf32> -> vector<8x128xf32>
    %c7 = arith.constant 7 : index
    %c0_28 = arith.constant 0 : index
    %c0_29 = arith.constant 0 : index
    %33 = vector.load %arg3[%c7, %c0_28, %c0_29] : memref<11x128x128xf32, #tpu.memory_space<vmem>>, vector<1x128x128xf32>
    %34 = vector.shape_cast %33 : vector<1x128x128xf32> to vector<128x128xf32>
    %cst_30 = arith.constant dense<0.000000e+00> : vector<8x128xf32>
    %35 = tpu.matmul %32, %34, %cst_30 {dimension_numbers = #tpu.dot_dimension_numbers<[1], [0], [0], [1], [0, 0, 1, 1], [], []>} : vector<8x128xf32>, vector<128x128xf32>, vector<8x128xf32> -> vector<8x128xf32>
    %36 = arith.addf %12, %35 : vector<8x128xf32>
    %cst_31 = arith.constant dense<0.000000e+00> : vector<128x128xf32>
    %37 = tpu.matmul %1, %31, %cst_31 {dimension_numbers = #tpu.dot_dimension_numbers<[1], [0], [0], [1], [0, 0, 1, 1], [], []>} : vector<128x128xf32>, vector<128x128xf32>, vector<128x128xf32> -> vector<128x128xf32>
    %c1 = arith.constant 1 : index
    %c0_32 = arith.constant 0 : index
    %c0_33 = arith.constant 0 : index
    %38 = vector.load %arg3[%c1, %c0_32, %c0_33] : memref<11x128x128xf32, #tpu.memory_space<vmem>>, vector<1x128x128xf32>
    %39 = vector.shape_cast %38 : vector<1x128x128xf32> to vector<128x128xf32>
    %cst_34 = arith.constant dense<0.000000e+00> : vector<128x128xf32>
    %40 = tpu.matmul %37, %39, %cst_34 {dimension_numbers = #tpu.dot_dimension_numbers<[1], [0], [0], [1], [0, 0, 1, 1], [], []>} : vector<128x128xf32>, vector<128x128xf32>, vector<128x128xf32> -> vector<128x128xf32>
    %c1_35 = arith.constant 1 : index
    %c0_36 = arith.constant 0 : index
    %c0_37 = arith.constant 0 : index
    %41 = vector.load %arg4[%c1_35, %c0_36, %c0_37] : memref<8x1x128xf32, #tpu.memory_space<vmem>>, vector<1x1x128xf32>
    %42 = vector.shape_cast %41 : vector<1x1x128xf32> to vector<1x128xf32>
    %43 = vector.broadcast %42 : vector<1x128xf32> to vector<128x128xf32>
    %44 = arith.addf %40, %43 : vector<128x128xf32>
    %cst_38 = arith.constant 0.000000e+00 : f32
    %45 = vector.broadcast %cst_38 : f32 to vector<128x128xf32>
    %46 = arith.maximumf %44, %45 : vector<128x128xf32>
    %c4 = arith.constant 4 : index
    %c0_39 = arith.constant 0 : index
    %c0_40 = arith.constant 0 : index
    %47 = vector.load %arg3[%c4, %c0_39, %c0_40] : memref<11x128x128xf32, #tpu.memory_space<vmem>>, vector<1x128x128xf32>
    %48 = vector.shape_cast %47 : vector<1x128x128xf32> to vector<128x128xf32>
    %cst_41 = arith.constant dense<0.000000e+00> : vector<128x128xf32>
    %49 = tpu.matmul %46, %48, %cst_41 {dimension_numbers = #tpu.dot_dimension_numbers<[1], [0], [0], [1], [0, 0, 1, 1], [], []>} : vector<128x128xf32>, vector<128x128xf32>, vector<128x128xf32> -> vector<128x128xf32>
    %c4_42 = arith.constant 4 : index
    %c0_43 = arith.constant 0 : index
    %c0_44 = arith.constant 0 : index
    %50 = vector.load %arg4[%c4_42, %c0_43, %c0_44] : memref<8x1x128xf32, #tpu.memory_space<vmem>>, vector<1x1x128xf32>
    %51 = vector.shape_cast %50 : vector<1x1x128xf32> to vector<1x128xf32>
    %52 = vector.broadcast %51 : vector<1x128xf32> to vector<128x128xf32>
    %53 = arith.addf %49, %52 : vector<128x128xf32>
    %cst_45 = arith.constant 0.000000e+00 : f32
    %54 = vector.broadcast %cst_45 : f32 to vector<128x128xf32>
    %55 = arith.maximumf %53, %54 : vector<128x128xf32>
    %cst_46 = arith.constant dense<0.000000e+00> : vector<8x128xf32>
    %56 = tpu.matmul %3, %55, %cst_46 {dimension_numbers = #tpu.dot_dimension_numbers<[1], [0], [0], [1], [0, 0, 1, 1], [], []>} : vector<8x128xf32>, vector<128x128xf32>, vector<8x128xf32> -> vector<8x128xf32>
    %c8 = arith.constant 8 : index
    %c0_47 = arith.constant 0 : index
    %c0_48 = arith.constant 0 : index
    %57 = vector.load %arg3[%c8, %c0_47, %c0_48] : memref<11x128x128xf32, #tpu.memory_space<vmem>>, vector<1x128x128xf32>
    %58 = vector.shape_cast %57 : vector<1x128x128xf32> to vector<128x128xf32>
    %cst_49 = arith.constant dense<0.000000e+00> : vector<8x128xf32>
    %59 = tpu.matmul %56, %58, %cst_49 {dimension_numbers = #tpu.dot_dimension_numbers<[1], [0], [0], [1], [0, 0, 1, 1], [], []>} : vector<8x128xf32>, vector<128x128xf32>, vector<8x128xf32> -> vector<8x128xf32>
    %60 = arith.addf %36, %59 : vector<8x128xf32>
    %cst_50 = arith.constant dense<0.000000e+00> : vector<128x128xf32>
    %61 = tpu.matmul %1, %55, %cst_50 {dimension_numbers = #tpu.dot_dimension_numbers<[1], [0], [0], [1], [0, 0, 1, 1], [], []>} : vector<128x128xf32>, vector<128x128xf32>, vector<128x128xf32> -> vector<128x128xf32>
    %c2 = arith.constant 2 : index
    %c0_51 = arith.constant 0 : index
    %c0_52 = arith.constant 0 : index
    %62 = vector.load %arg3[%c2, %c0_51, %c0_52] : memref<11x128x128xf32, #tpu.memory_space<vmem>>, vector<1x128x128xf32>
    %63 = vector.shape_cast %62 : vector<1x128x128xf32> to vector<128x128xf32>
    %cst_53 = arith.constant dense<0.000000e+00> : vector<128x128xf32>
    %64 = tpu.matmul %61, %63, %cst_53 {dimension_numbers = #tpu.dot_dimension_numbers<[1], [0], [0], [1], [0, 0, 1, 1], [], []>} : vector<128x128xf32>, vector<128x128xf32>, vector<128x128xf32> -> vector<128x128xf32>
    %c2_54 = arith.constant 2 : index
    %c0_55 = arith.constant 0 : index
    %c0_56 = arith.constant 0 : index
    %65 = vector.load %arg4[%c2_54, %c0_55, %c0_56] : memref<8x1x128xf32, #tpu.memory_space<vmem>>, vector<1x1x128xf32>
    %66 = vector.shape_cast %65 : vector<1x1x128xf32> to vector<1x128xf32>
    %67 = vector.broadcast %66 : vector<1x128xf32> to vector<128x128xf32>
    %68 = arith.addf %64, %67 : vector<128x128xf32>
    %cst_57 = arith.constant 0.000000e+00 : f32
    %69 = vector.broadcast %cst_57 : f32 to vector<128x128xf32>
    %70 = arith.maximumf %68, %69 : vector<128x128xf32>
    %c5 = arith.constant 5 : index
    %c0_58 = arith.constant 0 : index
    %c0_59 = arith.constant 0 : index
    %71 = vector.load %arg3[%c5, %c0_58, %c0_59] : memref<11x128x128xf32, #tpu.memory_space<vmem>>, vector<1x128x128xf32>
    %72 = vector.shape_cast %71 : vector<1x128x128xf32> to vector<128x128xf32>
    %cst_60 = arith.constant dense<0.000000e+00> : vector<128x128xf32>
    %73 = tpu.matmul %70, %72, %cst_60 {dimension_numbers = #tpu.dot_dimension_numbers<[1], [0], [0], [1], [0, 0, 1, 1], [], []>} : vector<128x128xf32>, vector<128x128xf32>, vector<128x128xf32> -> vector<128x128xf32>
    %c5_61 = arith.constant 5 : index
    %c0_62 = arith.constant 0 : index
    %c0_63 = arith.constant 0 : index
    %74 = vector.load %arg4[%c5_61, %c0_62, %c0_63] : memref<8x1x128xf32, #tpu.memory_space<vmem>>, vector<1x1x128xf32>
    %75 = vector.shape_cast %74 : vector<1x1x128xf32> to vector<1x128xf32>
    %76 = vector.broadcast %75 : vector<1x128xf32> to vector<128x128xf32>
    %77 = arith.addf %73, %76 : vector<128x128xf32>
    %cst_64 = arith.constant 0.000000e+00 : f32
    %78 = vector.broadcast %cst_64 : f32 to vector<128x128xf32>
    %79 = arith.maximumf %77, %78 : vector<128x128xf32>
    %cst_65 = arith.constant dense<0.000000e+00> : vector<8x128xf32>
    %80 = tpu.matmul %3, %79, %cst_65 {dimension_numbers = #tpu.dot_dimension_numbers<[1], [0], [0], [1], [0, 0, 1, 1], [], []>} : vector<8x128xf32>, vector<128x128xf32>, vector<8x128xf32> -> vector<8x128xf32>
    %c9 = arith.constant 9 : index
    %c0_66 = arith.constant 0 : index
    %c0_67 = arith.constant 0 : index
    %81 = vector.load %arg3[%c9, %c0_66, %c0_67] : memref<11x128x128xf32, #tpu.memory_space<vmem>>, vector<1x128x128xf32>
    %82 = vector.shape_cast %81 : vector<1x128x128xf32> to vector<128x128xf32>
    %cst_68 = arith.constant dense<0.000000e+00> : vector<8x128xf32>
    %83 = tpu.matmul %80, %82, %cst_68 {dimension_numbers = #tpu.dot_dimension_numbers<[1], [0], [0], [1], [0, 0, 1, 1], [], []>} : vector<8x128xf32>, vector<128x128xf32>, vector<8x128xf32> -> vector<8x128xf32>
    %84 = arith.addf %60, %83 : vector<8x128xf32>
    %cst_69 = arith.constant 0.000000e+00 : f32
    %85 = vector.broadcast %cst_69 : f32 to vector<8x128xf32>
    %86 = arith.maximumf %84, %85 : vector<8x128xf32>
    %c10 = arith.constant 10 : index
    %c0_70 = arith.constant 0 : index
    %c0_71 = arith.constant 0 : index
    %87 = vector.load %arg3[%c10, %c0_70, %c0_71] : memref<11x128x128xf32, #tpu.memory_space<vmem>>, vector<1x128x128xf32>
    %88 = vector.shape_cast %87 : vector<1x128x128xf32> to vector<128x128xf32>
    %cst_72 = arith.constant dense<0.000000e+00> : vector<8x128xf32>
    %89 = tpu.matmul %86, %88, %cst_72 {dimension_numbers = #tpu.dot_dimension_numbers<[1], [0], [0], [1], [0, 0, 1, 1], [], []>} : vector<8x128xf32>, vector<128x128xf32>, vector<8x128xf32> -> vector<8x128xf32>
    %c7_73 = arith.constant 7 : index
    %c0_74 = arith.constant 0 : index
    %c0_75 = arith.constant 0 : index
    %90 = vector.load %arg4[%c7_73, %c0_74, %c0_75] : memref<8x1x128xf32, #tpu.memory_space<vmem>>, vector<1x1x128xf32>
    %91 = vector.shape_cast %90 : vector<1x1x128xf32> to vector<1x128xf32>
    %92 = vector.broadcast %91 : vector<1x128xf32> to vector<8x128xf32>
    %93 = arith.addf %89, %92 : vector<8x128xf32>
    %c0_76 = arith.constant 0 : index
    %c0_77 = arith.constant 0 : index
    %94 = vector.load %arg5[%c0_76, %c0_77] : memref<8x128xf32, #tpu.memory_space<vmem>>, vector<8x128xf32>
    tpu.vector_store %arg5[%c0_76, %c0_77], %93 {strides = array<i32>} : memref<8x128xf32, #tpu.memory_space<vmem>>, vector<8x128xf32>,
    return
  }
}

</mosaic_0001>

<bundles_post_ra>
// kernel: gin_concat_forward.1
= control target key start
LH: loop header
LB: loop body
LE: loop exit
PB: predicated region body
PF: predicated region fallthrough
CT: control target
= control target key end

     0   :  { %10 = vsyncpa [#allocation3], 0  ;;  %s3716_s18 = smov [#allocation2]   ;;  %s4225_s0 = inlined_call_operand.vmem [shape: bf16[128,128], index: 0, kind: input, shape index: {}]   ;;  %s4226_s1 = inlined_call_operand.vmem [shape: bf16[8,128], index: 1, kind: input, shape index: {}]   ;;  %s4227_s2 = inlined_call_operand.vmem [shape: f32[128,128], index: 2, kind: input, shape index: {}]   ;;  %s4228_s3 = inlined_call_operand.hbm [shape: f32[11,128,128], index: 3, kind: input, shape index: {}]   ;;  %s4229_s4 = inlined_call_operand.vmem [shape: f32[8,1,128], index: 4, kind: input, shape index: {}]   ;;  %s4230_s5 = inlined_call_operand.vmem [shape: f32[8,128], index: 5, kind: output, shape index: {}]  }
   0x1   :  { %s22_s19 = sshll.u32 %s3716_s18, 4  ;;  %s23_s19 = int_to_ptr.vmem [resolvable:$true] %s22_s19 }
   0x2   :  { %s3702_s20 = scalar_lea.vmem %s23_s19, 22528  ;;  %p3707_p1 = scmp.lt.s32.totalorder %s23_s19, %s23_s19 }
   0x3   :  { %p3703_p0 = scmp.ne.s32.totalorder %s23_s19, %s3702_s20  ;;  %p3708_p2 = scmp.lt.s32.totalorder %s3702_s20, %s3702_s20 }
   0x5   :  { %p3709_p3 = por %p3708_p2, %p3707_p1 }
   0x7   :  { %p3710_p4 = pnand %p3709_p3, %p3703_p0 }
   0x9   :  { %3713 = shalt.err (!%p3710_p4)
}
   0xa   :  { %s3717_s21 = smov 128   ;;  %s3718_s22 = smov 8  }
   0xb   :  { %28 = dma.hbm_to_vmem [thread:$0]  %s4228_s3, 22528, %s23_s19, [#allocation3], %s3717_s21, %s3717_s21, %s3718_s22  }
   0xc   :  { %3714 = dma.done.wait [#allocation3], 22528  }
   0xd   :  { %3715 = vsyncadd [#allocation3], 4294944768  ;;  %v3719_v0 = vmov 0.0   ;;  %vm3720_vm0 = vmmov 0   ;;  %v3763_v1 = vld [vmem:[%s4227_s2 + $0x78] sm:$0xff]  ;;  %v3768_v2 = vld [vmem:[%s4227_s2 + $0x70] sm:$0xff] }
   0xe   :  { %2870 = vmatprep.subr.mxu0 %v3719_v0  ;;  %2902 = vmatprep.mubr.msk.f32.mxu0 %vm3720_vm0, %v3719_v0  ;;  %v3775_v3 = vld [vmem:[%s4227_s2 + $0x68] sm:$0xff]  ;;  %v3782_v4 = vld [vmem:[%s4227_s2 + $0x60] sm:$0xff]  ;;  %v3789_v5 = vld [vmem:[%s4227_s2 + $0x58] sm:$0xff] }
   0xf   :  { %2905 = vmatprep.subr.mxu1 %v3719_v0  ;;  %2937 = vmatprep.mubr.msk.f32.mxu1 %vm3720_vm0, %v3719_v0  ;;  %v3796_v6 = vld [vmem:[%s4227_s2 + $0x50] sm:$0xff]  ;;  %v172_v7 = vld [vmem:[#allocation2 + $0x378] sm:$0xff]  ;;  %v3803_v9 = vld [vmem:[%s4227_s2 + $0x48] sm:$0xff] }
  0x10   :  { %2871 = vmatpush3.msra.mxu0 %v3763_v1  ;;  %v171_v8 = vld [vmem:[#allocation2 + $0x370] sm:$0xff]  ;;  %2906 = vmatpush3.msra.mxu1 %v172_v7  ;;  %v170_v10 = vld [vmem:[#allocation2 + $0x368] sm:$0xff]  ;;  %v3811_v11 = vld [vmem:[%s4227_s2 + $0x40] sm:$0xff] }
  0x11   :  { %2872 = vmatprep.subr.mxu0 %v3719_v0  ;;  %2907 = vmatprep.subr.mxu1 %v3719_v0  ;;  %v169_v12 = vld [vmem:[#allocation2 + $0x360] sm:$0xff]  ;;  %v3819_v13 = vld [vmem:[%s4227_s2 + $0x38] sm:$0xff]  ;;  %v3827_v15 = vld [vmem:[%s4227_s2 + $0x30] sm:$0xff] }
  0x12   :  { %2873 = vmatpush3.msra.mxu0 %v3768_v2  ;;  %2908 = vmatpush3.msra.mxu1 %v171_v8  ;;  %v168_v14 = vld [vmem:[#allocation2 + $0x358] sm:$0xff]  ;;  %v167_v16 = vld [vmem:[#allocation2 + $0x350] sm:$0xff]  ;;  %v3835_v17 = vld [vmem:[%s4227_s2 + $0x28] sm:$0xff] }
  0x13   :  { %2874 = vmatprep.subr.mxu0 %v3719_v0  ;;  %2909 = vmatprep.subr.mxu1 %v3719_v0  ;;  %v166_v18 = vld [vmem:[#allocation2 + $0x348] sm:$0xff]  ;;  %v3843_v19 = vld [vmem:[%s4227_s2 + $0x20] sm:$0xff]  ;;  %v3851_v21 = vld [vmem:[%s4227_s2 + $0x18] sm:$0xff] }
  0x14   :  { %2875 = vmatpush3.msra.mxu0 %v3775_v3  ;;  %2910 = vmatpush3.msra.mxu1 %v170_v10  ;;  %v165_v20 = vld [vmem:[#allocation2 + $0x340] sm:$0xff]  ;;  %v164_v22 = vld [vmem:[#allocation2 + $0x338] sm:$0xff]  ;;  %v3859_v23 = vld [vmem:[%s4227_s2 + $0x10] sm:$0xff] }
  0x15   :  { %2876 = vmatprep.subr.mxu0 %v3719_v0  ;;  %2911 = vmatprep.subr.mxu1 %v3719_v0  ;;  %v163_v24 = vld [vmem:[#allocation2 + $0x330] sm:$0xff]  ;;  %v66_v25 = vld [vmem:[%s4226_s1] sm:$0xf]  ;;  %v69_v26 = vld [vmem:[%s4227_s2 + $0x8] sm:$0xff] }
  0x16   :  { %2877 = vmatpush3.msra.mxu0 %v3782_v4  ;;  %2912 = vmatpush3.msra.mxu1 %v169_v12  ;;  %v2391_v27 = vld [vmem:[%s4225_s0] sm:$0xff]   ;;  %v162_v28 = vld [vmem:[#allocation2 + $0x328] sm:$0xff]  ;;  %v3879_v30 = vunpack.c.l.bf16 %v66_v25  ;;  %v160_v33 = vld [vmem:[#allocation2 + $0x318] sm:$0xff] }
  0x17   :  { %2878 = vmatprep.subr.mxu0 %v3719_v0  ;;  %2913 = vmatprep.subr.mxu1 %v3719_v0  ;;  %v68_v29 = vld [vmem:[%s4227_s2] sm:$0xff]  ;;  %v3882_v32 = vunpack.c.l.bf16 %v2391_v27  ;;  %v159_v34 = vld [vmem:[#allocation2 + $0x310] sm:$0xff]  ;;  %v158_v35 = vld [vmem:[#allocation2 + $0x308] sm:$0xff]  ;;  %v3923_v37 = vunpack.c.h.bf16 %v2391_v27 }
  0x18   :  { %2879 = vmatpush3.msra.mxu0 %v3789_v5  ;;  %2914 = vmatpush3.msra.mxu1 %v168_v14  ;;  %v161_v31 = vld [vmem:[#allocation2 + $0x320] sm:$0xff]  ;;  %v2422_v36 = vld [vmem:[%s4225_s0 + $0x8] sm:$0xff]   ;;  %v2423_v39 = vld [vmem:[%s4225_s0 + $0x10] sm:$0xff]  }
  0x19   :  { %2880 = vmatprep.subr.mxu0 %v3719_v0  ;;  %2915 = vmatprep.subr.mxu1 %v3719_v0  ;;  %v3925_v38 = vunpack.c.l.bf16 %v2422_v36  ;;  %v3931_v40 = vunpack.c.h.bf16 %v2422_v36  ;;  %v3934_v41 = vunpack.c.l.bf16 %v2423_v39  ;;  %v2424_v42 = vld [vmem:[%s4225_s0 + $0x18] sm:$0xff]   ;;  %v3940_v43 = vunpack.c.h.bf16 %v2423_v39  ;;  %v2425_v45 = vld [vmem:[%s4225_s0 + $0x20] sm:$0xff]   ;;  %v2426_v48 = vld [vmem:[%s4225_s0 + $0x28] sm:$0xff]  }
  0x1a   :  { %2881 = vmatpush3.msra.mxu0 %v3796_v6  ;;  %2916 = vmatpush3.msra.mxu1 %v167_v16  ;;  %v3943_v44 = vunpack.c.l.bf16 %v2424_v42  ;;  %v3949_v46 = vunpack.c.h.bf16 %v2424_v42  ;;  %v3952_v47 = vunpack.c.l.bf16 %v2425_v45  ;;  %v3958_v49 = vunpack.c.h.bf16 %v2425_v45  ;;  %v2427_v51 = vld [vmem:[%s4225_s0 + $0x30] sm:$0xff]   ;;  %v2428_v54 = vld [vmem:[%s4225_s0 + $0x38] sm:$0xff]   ;;  %v157_v58 = vld [vmem:[#allocation2 + $0x300] sm:$0xff] }
  0x1b   :  { %2882 = vmatprep.subr.mxu0 %v3719_v0  ;;  %2917 = vmatprep.subr.mxu1 %v3719_v0  ;;  %v3961_v50 = vunpack.c.l.bf16 %v2426_v48  ;;  %v3967_v52 = vunpack.c.h.bf16 %v2426_v48  ;;  %v3970_v53 = vunpack.c.l.bf16 %v2427_v51  ;;  %v3976_v55 = vunpack.c.h.bf16 %v2427_v51  ;;  %v410_v59 = vld [vmem:[#allocation2 + $0x78] sm:$0xff]  ;;  %v409_v61 = vld [vmem:[#allocation2 + $0x70] sm:$0xff]  ;;  %v408_v63 = vld [vmem:[#allocation2 + $0x68] sm:$0xff] }
  0x1c   :  { %2883 = vmatpush3.msra.mxu0 %v3803_v9  ;;  %2918 = vmatpush3.msra.mxu1 %v166_v18  ;;  %v3979_v56 = vunpack.c.l.bf16 %v2428_v54  ;;  %v3982_v57 = vunpack.c.h.bf16 %v2428_v54  ;;  %v401_v7 = vld [vmem:[#allocation2 + $0x30] sm:$0xff]  ;;  %v400_v8 = vld [vmem:[#allocation2 + $0x28] sm:$0xff]  ;;  %v398_v10 = vld [vmem:[#allocation2 + $0x18] sm:$0xff] }
  0x1d   :  { %2884 = vmatprep.subr.mxu0 %v3719_v0  ;;  %2919 = vmatprep.subr.mxu1 %v3719_v0  ;;  %v396_v12 = vld [vmem:[#allocation2 + $0x8] sm:$0xff]  ;;  %v591_v36 = vld [vmem:[#allocation2 + $0x1d8] sm:$0xff]  ;;  %v590_v39 = vld [vmem:[#allocation2 + $0x1d0] sm:$0xff] }
  0x1e   :  { %2885 = vmatpush3.msra.mxu0 %v3811_v11  ;;  %2920 = vmatpush3.msra.mxu1 %v165_v20  ;;  %v589_v42 = vld [vmem:[#allocation2 + $0x1c8] sm:$0xff]  ;;  %v588_v45 = vld [vmem:[#allocation2 + $0x1c0] sm:$0xff]  ;;  %v587_v48 = vld [vmem:[#allocation2 + $0x1b8] sm:$0xff] }
  0x1f   :  { %2886 = vmatprep.subr.mxu0 %v3719_v0  ;;  %2921 = vmatprep.subr.mxu1 %v3719_v0  ;;  %v586_v51 = vld [vmem:[#allocation2 + $0x1b0] sm:$0xff]  ;;  %v585_v54 = vld [vmem:[#allocation2 + $0x1a8] sm:$0xff] }
  0x20   :  { %2887 = vmatpush3.msra.mxu0 %v3819_v13  ;;  %2922 = vmatpush3.msra.mxu1 %v164_v22 }
  0x21   :  { %2888 = vmatprep.subr.mxu0 %v3719_v0  ;;  %2923 = vmatprep.subr.mxu1 %v3719_v0 }
  0x22   :  { %2889 = vmatpush3.msra.mxu0 %v3827_v15  ;;  %2924 = vmatpush3.msra.mxu1 %v163_v24 }
  0x23   :  { %2890 = vmatprep.subr.mxu0 %v3719_v0  ;;  %2925 = vmatprep.subr.mxu1 %v3719_v0 }
  0x24   :  { %2891 = vmatpush3.msra.mxu0 %v3835_v17  ;;  %2926 = vmatpush3.msra.mxu1 %v162_v28 }
  0x25   :  { %2892 = vmatprep.subr.mxu0 %v3719_v0  ;;  %2927 = vmatprep.subr.mxu1 %v3719_v0 }
  0x26   :  { %2893 = vmatpush3.msra.mxu0 %v3843_v19  ;;  %2928 = vmatpush3.msra.mxu1 %v161_v31  ;;  %v595_v31 = vld [vmem:[#allocation2 + $0x1f8] sm:$0xff] }
  0x27   :  { %2894 = vmatprep.subr.mxu0 %v3719_v0  ;;  %2929 = vmatprep.subr.mxu1 %v3719_v0 }
  0x28   :  { %2895 = vmatpush3.msra.mxu0 %v3851_v21  ;;  %2930 = vmatpush3.msra.mxu1 %v160_v33  ;;  %v594_v33 = vld [vmem:[#allocation2 + $0x1f0] sm:$0xff] }
  0x29   :  { %2896 = vmatprep.subr.mxu0 %v3719_v0  ;;  %2931 = vmatprep.subr.mxu1 %v3719_v0 }
  0x2a   :  { %2897 = vmatpush3.msra.mxu0 %v3859_v23  ;;  %2932 = vmatpush3.msra.mxu1 %v159_v34  ;;  %v593_v34 = vld [vmem:[#allocation2 + $0x1e8] sm:$0xff] }
  0x2b   :  { %2898 = vmatprep.subr.mxu0 %v3719_v0  ;;  %2933 = vmatprep.subr.mxu1 %v3719_v0 }
  0x2c   :  { %2899 = vmatpush3.msra.mxu0 %v69_v26  ;;  %2934 = vmatpush3.msra.mxu1 %v158_v35  ;;  %v592_v35 = vld [vmem:[#allocation2 + $0x1e0] sm:$0xff] }
  0x2d   :  { %2900 = vmatprep.subr.mxu0 %v3719_v0  ;;  %2935 = vmatprep.subr.mxu1 %v3719_v0 }
  0x2e   :  { %2901 = vmatpush3.msra.mxu0 %v68_v29  ;;  %2936 = vmatpush3.msra.mxu1 %v157_v58  ;;  %v584_v58 = vld [vmem:[#allocation2 + $0x1a0] sm:$0xff] }
  0x2f   :  { %2903 = vmatmul.mubr.f32.vlgmr.msra.gmra.mxu0 %v3879_v30  ;;  %2940 = vmatprep.subr.mxu0 %v3763_v1 }
  0x30   :  { %2941 = vmatpush3.msra.mxu0 %v3763_v1  ;;  %2972 = vmatprep.mubr.f32.mxu0 %v3882_v32  ;;  %v407_v1 = vld [vmem:[#allocation2 + $0x60] sm:$0xff] }
  0x31   :  { %2942 = vmatprep.subr.mxu0 %v3768_v2  ;;  %2996 = vmatprep.subr.mxu1 %v410_v59 }
  0x32   :  { %2943 = vmatpush3.msra.mxu0 %v3768_v2  ;;  %v406_v2 = vld [vmem:[#allocation2 + $0x58] sm:$0xff] }
  0x33   :  { %2944 = vmatprep.subr.mxu0 %v3775_v3 }
  0x34   :  { %2945 = vmatpush3.msra.mxu0 %v3775_v3  ;;  %v405_v3 = vld [vmem:[#allocation2 + $0x50] sm:$0xff] }
  0x35   :  { %2946 = vmatprep.subr.mxu0 %v3782_v4 }
  0x36   :  { %2947 = vmatpush3.msra.mxu0 %v3782_v4  ;;  %v404_v4 = vld [vmem:[#allocation2 + $0x48] sm:$0xff] }
  0x37   :  { %2948 = vmatprep.subr.mxu0 %v3789_v5 }
  0x38   :  { %2949 = vmatpush3.msra.mxu0 %v3789_v5  ;;  %v403_v5 = vld [vmem:[#allocation2 + $0x40] sm:$0xff] }
  0x39   :  { %2950 = vmatprep.subr.mxu0 %v3796_v6 }
  0x3a   :  { %2951 = vmatpush3.msra.mxu0 %v3796_v6  ;;  %v402_v6 = vld [vmem:[#allocation2 + $0x38] sm:$0xff] }
  0x3b   :  { %2952 = vmatprep.subr.mxu0 %v3803_v9 }
  0x3c   :  { %2953 = vmatpush3.msra.mxu0 %v3803_v9  ;;  %v399_v9 = vld [vmem:[#allocation2 + $0x20] sm:$0xff] }
  0x3d   :  { %2954 = vmatprep.subr.mxu0 %v3811_v11 }
  0x3e   :  { %2955 = vmatpush3.msra.mxu0 %v3811_v11  ;;  %v397_v11 = vld [vmem:[#allocation2 + $0x10] sm:$0xff] }
  0x3f   :  { %2956 = vmatprep.subr.mxu0 %v3819_v13 }
  0x40   :  { %2957 = vmatpush3.msra.mxu0 %v3819_v13  ;;  %v395_v13 = vld [vmem:[#allocation2] sm:$0xff] }
  0x41   :  { %2958 = vmatprep.subr.mxu0 %v3827_v15 }
  0x42   :  { %2959 = vmatpush3.msra.mxu0 %v3827_v15 }
  0x43   :  { %2960 = vmatprep.subr.mxu0 %v3835_v17 }
  0x44   :  { %2961 = vmatpush3.msra.mxu0 %v3835_v17 }
  0x45   :  { %2962 = vmatprep.subr.mxu0 %v3843_v19 }
  0x46   :  { %2963 = vmatpush3.msra.mxu0 %v3843_v19 }
  0x47   :  { %2964 = vmatprep.subr.mxu0 %v3851_v21 }
  0x48   :  { %2965 = vmatpush3.msra.mxu0 %v3851_v21 }
  0x49   :  { %2966 = vmatprep.subr.mxu0 %v3859_v23 }
  0x4a   :  { %2967 = vmatpush3.msra.mxu0 %v3859_v23 }
  0x4b   :  { %2968 = vmatprep.subr.mxu0 %v69_v26 }
  0x4c   :  { %2969 = vmatpush3.msra.mxu0 %v69_v26 }
  0x4d   :  { %2970 = vmatprep.subr.mxu0 %v68_v29 }
  0x4e   :  { %2971 = vmatpush3.msra.mxu0 %v68_v29 }
  0x4f   :  { %2973 = vmatmul.mubr.f32.vlgmr.msra.gmra.mxu0 %v3923_v37  ;;  %3052 = vmatprep.subr.mxu0 %v595_v31 }
  0x50   :  { %2975 = vmatprep.mubr.f32.mxu0 %v3925_v38  ;;  %3053 = vmatpush3.msra.mxu0 %v595_v31 }
  0x51   :  { %3054 = vmatprep.subr.mxu0 %v594_v33 }
  0x52   :  { %3055 = vmatpush3.msra.mxu0 %v594_v33 }
  0x53   :  { %2976 = vmatmul.mubr.f32.gmra.mxu0 %v3931_v40  ;;  %3056 = vmatprep.subr.mxu0 %v593_v34 }
  0x54   :  { %2978 = vmatprep.mubr.f32.mxu0 %v3934_v41  ;;  %3057 = vmatpush3.msra.mxu0 %v593_v34 }
  0x55   :  { %3058 = vmatprep.subr.mxu0 %v592_v35 }
  0x56   :  { %3059 = vmatpush3.msra.mxu0 %v592_v35 }
  0x57   :  { %2979 = vmatmul.mubr.f32.gmra.mxu0 %v3940_v43  ;;  %3060 = vmatprep.subr.mxu0 %v591_v36 }
  0x58   :  { %2981 = vmatprep.mubr.f32.mxu0 %v3943_v44  ;;  %3061 = vmatpush3.msra.mxu0 %v591_v36 }
  0x59   :  { %3062 = vmatprep.subr.mxu0 %v590_v39 }
  0x5a   :  { %3063 = vmatpush3.msra.mxu0 %v590_v39 }
  0x5b   :  { %2982 = vmatmul.mubr.f32.gmra.mxu0 %v3949_v46  ;;  %3064 = vmatprep.subr.mxu0 %v589_v42 }
  0x5c   :  { %2984 = vmatprep.mubr.f32.mxu0 %v3952_v47  ;;  %3065 = vmatpush3.msra.mxu0 %v589_v42 }
  0x5d   :  { %3066 = vmatprep.subr.mxu0 %v588_v45 }
  0x5e   :  { %3067 = vmatpush3.msra.mxu0 %v588_v45 }
  0x5f   :  { %2985 = vmatmul.mubr.f32.gmra.mxu0 %v3958_v49  ;;  %3068 = vmatprep.subr.mxu0 %v587_v48 }
  0x60   :  { %2987 = vmatprep.mubr.f32.mxu0 %v3961_v50  ;;  %3069 = vmatpush3.msra.mxu0 %v587_v48 }
  0x61   :  { %3070 = vmatprep.subr.mxu0 %v586_v51 }
  0x62   :  { %3071 = vmatpush3.msra.mxu0 %v586_v51 }
  0x63   :  { %2988 = vmatmul.mubr.f32.gmra.mxu0 %v3967_v52  ;;  %3072 = vmatprep.subr.mxu0 %v585_v54 }
  0x64   :  { %2990 = vmatprep.mubr.f32.mxu0 %v3970_v53  ;;  %3073 = vmatpush3.msra.mxu0 %v585_v54 }
  0x65   :  { %3074 = vmatprep.subr.mxu0 %v584_v58 }
  0x66   :  { %3075 = vmatpush3.msra.mxu0 %v584_v58 }
  0x67   :  { %2991 = vmatmul.mubr.f32.gmra.mxu0 %v3976_v55 }
  0x68   :  { %2993 = vmatprep.mubr.f32.mxu0 %v3979_v56 }
  0x6b   :  { %2994 = vmatmul.mubr.f32.gmra.mxu0 %v3982_v57 }
  0xef   :  { %v152_v60 = vpop.f32.mrf.mxu0 }
  0xf0   :  { %2938 = vmatmul.mubr.f32.vlgmr.msra.gmra.mxu1 %v152_v60  ;;  %v582_v60 = vld [vmem:[#allocation2 + $0x190] sm:$0xff] }
  0xf1   :  { %v2904_v62 = vpop.f32.mrf.mxu0  ;;  %2997 = vmatpush3.msra.mxu1 %v410_v59  ;;  %v583_v59 = vld [vmem:[#allocation2 + $0x198] sm:$0xff] }
  0xf2   :  { %2998 = vmatprep.subr.mxu1 %v409_v61  ;;  %3076 = vmatprep.subr.mxu0 %v583_v59  ;;  %v580_v62 = vld [vmem:[#allocation2 + $0x180] sm:$0xff] }
  0xf3   :  { %2999 = vmatpush3.msra.mxu1 %v409_v61  ;;  %3077 = vmatpush3.msra.mxu0 %v583_v59  ;;  %v581_v61 = vld [vmem:[#allocation2 + $0x188] sm:$0xff] }
  0xf4   :  { %3000 = vmatprep.subr.mxu1 %v408_v63  ;;  %3078 = vmatprep.subr.mxu0 %v582_v60 }
  0xf5   :  { %3001 = vmatpush3.msra.mxu1 %v408_v63  ;;  %3079 = vmatpush3.msra.mxu0 %v582_v60 }
  0xf6   :  { %3002 = vmatprep.subr.mxu1 %v407_v1  ;;  %3080 = vmatprep.subr.mxu0 %v581_v61 }
  0xf7   :  { %3003 = vmatpush3.msra.mxu1 %v407_v1  ;;  %3081 = vmatpush3.msra.mxu0 %v581_v61 }
  0xf8   :  { %3004 = vmatprep.subr.mxu1 %v406_v2  ;;  %3082 = vmatprep.subr.mxu0 %v580_v62 }
  0xf9   :  { %3005 = vmatpush3.msra.mxu1 %v406_v2  ;;  %3083 = vmatpush3.msra.mxu0 %v580_v62  ;;  %v2377_v2 = vld [vmem:[%s4229_s4] ss:$0 sm:$0xff] }
  0xfa   :  { %3006 = vmatprep.subr.mxu1 %v405_v3  ;;  %3143 = vmatprep.subr.mxu0 %v3719_v0 }
  0xfb   :  { %3007 = vmatpush3.msra.mxu1 %v405_v3 }
  0xfc   :  { %3008 = vmatprep.subr.mxu1 %v404_v4 }
  0xfd   :  { %3009 = vmatpush3.msra.mxu1 %v404_v4 }
  0xfe   :  { %3010 = vmatprep.subr.mxu1 %v403_v5 }
  0xff   :  { %3011 = vmatpush3.msra.mxu1 %v403_v5 }
 0x100   :  { %3012 = vmatprep.subr.mxu1 %v402_v6 }
 0x101   :  { %3013 = vmatpush3.msra.mxu1 %v402_v6 }
 0x102   :  { %3014 = vmatprep.subr.mxu1 %v401_v7 }
 0x103   :  { %3015 = vmatpush3.msra.mxu1 %v401_v7 }
 0x104   :  { %3016 = vmatprep.subr.mxu1 %v400_v8 }
 0x105   :  { %3017 = vmatpush3.msra.mxu1 %v400_v8 }
 0x106   :  { %3018 = vmatprep.subr.mxu1 %v399_v9 }
 0x107   :  { %3019 = vmatpush3.msra.mxu1 %v399_v9 }
 0x108   :  { %3020 = vmatprep.subr.mxu1 %v398_v10 }
 0x109   :  { %3021 = vmatpush3.msra.mxu1 %v398_v10 }
 0x10a   :  { %3022 = vmatprep.subr.mxu1 %v397_v11 }
 0x10b   :  { %3023 = vmatpush3.msra.mxu1 %v397_v11 }
 0x10c   :  { %3024 = vmatprep.subr.mxu1 %v396_v12 }
 0x10d   :  { %3025 = vmatpush3.msra.mxu1 %v396_v12 }
 0x10e   :  { %3026 = vmatprep.subr.mxu1 %v395_v13 }
 0x10f   :  { %v2974_v14 = vpop.f32.mrf.mxu0  ;;  %3027 = vmatpush3.msra.mxu1 %v395_v13 }
 0x110   :  { %3108 = vmatprep.subr.mxu1 %v3719_v0 }
 0x111   :  { %v316_v15 = vpop.f32.mrf.mxu0 }
 0x112   :  { %3028 = vmatprep.mubr.f32.mxu1 %v316_v15 }
 0x113   :  { %v2977_v16 = vpop.f32.mrf.mxu0  ;;  %3029 = vmatmul.mubr.f32.vlgmr.msra.gmra.mxu1 %v2974_v14 }
 0x115   :  { %v326_v17 = vpop.f32.mrf.mxu0 }
 0x116   :  { %3031 = vmatprep.mubr.f32.mxu1 %v326_v17 }
 0x117   :  { %v2980_v18 = vpop.f32.mrf.mxu0  ;;  %3032 = vmatmul.mubr.f32.gmra.mxu1 %v2977_v16 }
 0x119   :  { %v336_v19 = vpop.f32.mrf.mxu0 }
 0x11a   :  { %3034 = vmatprep.mubr.f32.mxu1 %v336_v19 }
 0x11b   :  { %v2983_v20 = vpop.f32.mrf.mxu0  ;;  %3035 = vmatmul.mubr.f32.gmra.mxu1 %v2980_v18 }
 0x11d   :  { %v346_v21 = vpop.f32.mrf.mxu0 }
 0x11e   :  { %3037 = vmatprep.mubr.f32.mxu1 %v346_v21 }
 0x11f   :  { %v2986_v22 = vpop.f32.mrf.mxu0  ;;  %3038 = vmatmul.mubr.f32.gmra.mxu1 %v2983_v20 }
 0x121   :  { %v356_v23 = vpop.f32.mrf.mxu0 }
 0x122   :  { %3040 = vmatprep.mubr.f32.mxu1 %v356_v23 }
 0x123   :  { %v2989_v24 = vpop.f32.mrf.mxu0  ;;  %3041 = vmatmul.mubr.f32.gmra.mxu1 %v2986_v22 }
 0x125   :  { %v366_v25 = vpop.f32.mrf.mxu0 }
 0x126   :  { %3043 = vmatprep.mubr.f32.mxu1 %v366_v25 }
 0x127   :  { %v2992_v26 = vpop.f32.mrf.mxu0  ;;  %3044 = vmatmul.mubr.f32.gmra.mxu1 %v2989_v24 }
 0x129   :  { %v376_v27 = vpop.f32.mrf.mxu0 }
 0x12a   :  { %3046 = vmatprep.mubr.f32.mxu1 %v376_v27 }
 0x12b   :  { %v2995_v28 = vpop.f32.mrf.mxu0  ;;  %3047 = vmatmul.mubr.f32.gmra.mxu1 %v2992_v26 }
 0x12d   :  { %v386_v29 = vpop.f32.mrf.mxu0 }
 0x12e   :  { %3049 = vmatprep.mubr.f32.mxu1 %v386_v29 }
 0x12f   :  { %3050 = vmatmul.mubr.f32.gmra.mxu1 %v2995_v28 }
 0x130   :  { %3140 = vmatprep.mubr.msk.f32.mxu1 %vm3720_vm0, %v3719_v0 }
 0x1b0   :  { %v3990_v63 = vpop.f32.mrf.mxu1 }
 0x1b2   :  { %v2939_v1 = vpop.f32.mrf.mxu1 }
 0x1d3   :  { %v3030_v3 = vpop.f32.mrf.mxu1 }
 0x1d4   :  { %v490_v4 = vadd.f32 %v3030_v3, %v2377_v2 }
 0x1d5   :  { %v484_v5 = vpop.f32.mrf.mxu1 }
 0x1d6   :  { %v485_v6 = vadd.f32 %v2377_v2, %v484_v5  ;;  %v564_v9 = vmax.f32 %v490_v4, 0.0 }
 0x1d7   :  { %v3033_v7 = vpop.f32.mrf.mxu1 }
 0x1d8   :  { %v563_v8 = vmax.f32 %v485_v6, 0.0  ;;  %v500_v10 = vadd.f32 %v3033_v7, %v2377_v2  ;;  %v851_v7 = vld [vmem:[#allocation2 + $0x3f8] sm:$0xff] }
 0x1d9   :  { %v494_v11 = vpop.f32.mrf.mxu1 }
 0x1da   :  { %v495_v12 = vadd.f32 %v2377_v2, %v494_v11  ;;  %3084 = vmatprep.mubr.f32.mxu0 %v563_v8  ;;  %v566_v15 = vmax.f32 %v500_v10, 0.0  ;;  %v850_v8 = vld [vmem:[#allocation2 + $0x3f0] sm:$0xff] }
 0x1db   :  { %v3036_v13 = vpop.f32.mrf.mxu1  ;;  %3085 = vmatmul.mubr.f32.vlgmr.msra.gmra.mxu0 %v564_v9  ;;  %v849_v9 = vld [vmem:[#allocation2 + $0x3e8] sm:$0xff] }
 0x1dc   :  { %v565_v14 = vmax.f32 %v495_v12, 0.0  ;;  %v510_v16 = vadd.f32 %v3036_v13, %v2377_v2  ;;  %3144 = vmatpush3.msra.mxu0 %v851_v7  ;;  %v847_v12 = vld [vmem:[#allocation2 + $0x3d8] sm:$0xff] }
 0x1dd   :  { %v504_v17 = vpop.f32.mrf.mxu1  ;;  %3145 = vmatprep.subr.mxu0 %v3719_v0 }
 0x1de   :  { %v505_v18 = vadd.f32 %v2377_v2, %v504_v17  ;;  %3087 = vmatprep.mubr.f32.mxu0 %v565_v14  ;;  %v568_v21 = vmax.f32 %v510_v16, 0.0  ;;  %3146 = vmatpush3.msra.mxu0 %v850_v8  ;;  %v846_v14 = vld [vmem:[#allocation2 + $0x3d0] sm:$0xff]  ;;  %v845_v16 = vld [vmem:[#allocation2 + $0x3c8] sm:$0xff] }
 0x1df   :  { %v3039_v19 = vpop.f32.mrf.mxu1  ;;  %3088 = vmatmul.mubr.f32.gmra.mxu0 %v566_v15  ;;  %3147 = vmatprep.subr.mxu0 %v3719_v0 }
 0x1e0   :  { %v567_v20 = vmax.f32 %v505_v18, 0.0  ;;  %v520_v22 = vadd.f32 %v3039_v19, %v2377_v2  ;;  %3148 = vmatpush3.msra.mxu0 %v849_v9  ;;  %v844_v18 = vld [vmem:[#allocation2 + $0x3c0] sm:$0xff] }
 0x1e1   :  { %v514_v23 = vpop.f32.mrf.mxu1  ;;  %3149 = vmatprep.subr.mxu0 %v3719_v0 }
 0x1e2   :  { %v515_v24 = vadd.f32 %v2377_v2, %v514_v23  ;;  %3090 = vmatprep.mubr.f32.mxu0 %v567_v20  ;;  %v570_v27 = vmax.f32 %v520_v22, 0.0  ;;  %v843_v20 = vld [vmem:[#allocation2 + $0x3b8] sm:$0xff]  ;;  %v842_v22 = vld [vmem:[#allocation2 + $0x3b0] sm:$0xff] }
 0x1e3   :  { %v3042_v25 = vpop.f32.mrf.mxu1  ;;  %3091 = vmatmul.mubr.f32.gmra.mxu0 %v568_v21 }
 0x1e4   :  { %v569_v26 = vmax.f32 %v515_v24, 0.0  ;;  %v530_v28 = vadd.f32 %v3042_v25, %v2377_v2  ;;  %v841_v24 = vld [vmem:[#allocation2 + $0x3a8] sm:$0xff] }
 0x1e5   :  { %v524_v29 = vpop.f32.mrf.mxu1 }
 0x1e6   :  { %v525_v31 = vadd.f32 %v2377_v2, %v524_v29  ;;  %3093 = vmatprep.mubr.f32.mxu0 %v569_v26  ;;  %v572_v35 = vmax.f32 %v530_v28, 0.0  ;;  %v840_v26 = vld [vmem:[#allocation2 + $0x3a0] sm:$0xff]  ;;  %v839_v28 = vld [vmem:[#allocation2 + $0x398] sm:$0xff] }
 0x1e7   :  { %v3045_v33 = vpop.f32.mrf.mxu1  ;;  %3094 = vmatmul.mubr.f32.gmra.mxu0 %v570_v27 }
 0x1e8   :  { %v571_v34 = vmax.f32 %v525_v31, 0.0  ;;  %v540_v36 = vadd.f32 %v3045_v33, %v2377_v2  ;;  %v838_v31 = vld [vmem:[#allocation2 + $0x390] sm:$0xff] }
 0x1e9   :  { %v534_v39 = vpop.f32.mrf.mxu1 }
 0x1ea   :  { %v535_v42 = vadd.f32 %v2377_v2, %v534_v39  ;;  %3096 = vmatprep.mubr.f32.mxu0 %v571_v34  ;;  %v574_v51 = vmax.f32 %v540_v36, 0.0  ;;  %v837_v34 = vld [vmem:[#allocation2 + $0x388] sm:$0xff]  ;;  %v2379_v39 = vld [vmem:[%s4229_s4 + $0x3] ss:$0 sm:$0xff] }
 0x1eb   :  { %v3048_v45 = vpop.f32.mrf.mxu1  ;;  %3097 = vmatmul.mubr.f32.gmra.mxu0 %v572_v35 }
 0x1ec   :  { %v573_v48 = vmax.f32 %v535_v42, 0.0  ;;  %v550_v54 = vadd.f32 %v3048_v45, %v2377_v2 }
 0x1ed   :  { %v544_v58 = vpop.f32.mrf.mxu1 }
 0x1ee   :  { %v545_v59 = vadd.f32 %v2377_v2, %v544_v58  ;;  %3099 = vmatprep.mubr.f32.mxu0 %v573_v48  ;;  %v576_v62 = vmax.f32 %v550_v54, 0.0 }
 0x1ef   :  { %v3051_v60 = vpop.f32.mrf.mxu1  ;;  %3100 = vmatmul.mubr.f32.gmra.mxu0 %v574_v51 }
 0x1f0   :  { %v575_v61 = vmax.f32 %v545_v59, 0.0  ;;  %v560_v1 = vadd.f32 %v3051_v60, %v2377_v2 }
 0x1f1   :  { %v554_v3 = vpop.f32.mrf.mxu1 }
 0x1f2   :  { %v555_v4 = vadd.f32 %v2377_v2, %v554_v3  ;;  %3102 = vmatprep.mubr.f32.mxu0 %v575_v61  ;;  %v578_v6 = vmax.f32 %v560_v1, 0.0  ;;  %v848_v2 = vld [vmem:[#allocation2 + $0x3e0] sm:$0xff] }
 0x1f3   :  { %3103 = vmatmul.mubr.f32.gmra.mxu0 %v576_v62 }
 0x1f4   :  { %v577_v5 = vmax.f32 %v555_v4, 0.0  ;;  %3150 = vmatpush3.msra.mxu0 %v848_v2 }
 0x1f5   :  { %3151 = vmatprep.subr.mxu0 %v3719_v0 }
 0x1f6   :  { %3105 = vmatprep.mubr.f32.mxu0 %v577_v5  ;;  %3152 = vmatpush3.msra.mxu0 %v847_v12 }
 0x1f7   :  { %3106 = vmatmul.mubr.f32.gmra.mxu0 %v578_v6  ;;  %3153 = vmatprep.subr.mxu0 %v3719_v0 }
 0x1f8   :  { %3175 = vmatprep.mubr.msk.f32.mxu0 %vm3720_vm0, %v3719_v0  ;;  %3154 = vmatpush3.msra.mxu0 %v846_v14 }
 0x1f9   :  { %3155 = vmatprep.subr.mxu0 %v3719_v0 }
 0x1fa   :  { %3156 = vmatpush3.msra.mxu0 %v845_v16 }
 0x1fb   :  { %3157 = vmatprep.subr.mxu0 %v3719_v0 }
 0x1fc   :  { %3158 = vmatpush3.msra.mxu0 %v844_v18 }
 0x1fd   :  { %3159 = vmatprep.subr.mxu0 %v3719_v0 }
 0x1fe   :  { %3160 = vmatpush3.msra.mxu0 %v843_v20 }
 0x1ff   :  { %3161 = vmatprep.subr.mxu0 %v3719_v0 }
 0x200   :  { %3162 = vmatpush3.msra.mxu0 %v842_v22 }
 0x201   :  { %3163 = vmatprep.subr.mxu0 %v3719_v0 }
 0x202   :  { %3164 = vmatpush3.msra.mxu0 %v841_v24 }
 0x203   :  { %3165 = vmatprep.subr.mxu0 %v3719_v0 }
 0x204   :  { %3166 = vmatpush3.msra.mxu0 %v840_v26 }
 0x205   :  { %3167 = vmatprep.subr.mxu0 %v3719_v0 }
 0x206   :  { %3168 = vmatpush3.msra.mxu0 %v839_v28  ;;  %v1083_v28 = vld [vmem:[#allocation2 + $0xf0] sm:$0xff] }
 0x207   :  { %3169 = vmatprep.subr.mxu0 %v3719_v0 }
 0x208   :  { %3170 = vmatpush3.msra.mxu0 %v838_v31  ;;  %v1082_v31 = vld [vmem:[#allocation2 + $0xe8] sm:$0xff] }
 0x209   :  { %3171 = vmatprep.subr.mxu0 %v3719_v0 }
 0x20a   :  { %3172 = vmatpush3.msra.mxu0 %v837_v34  ;;  %v1080_v34 = vld [vmem:[#allocation2 + $0xd8] sm:$0xff] }
 0x20b   :  { %3173 = vmatprep.subr.mxu0 %v3719_v0 }
 0x29b   :  { %v3998_v10 = vpop.f32.mrf.mxu0 }
 0x29d   :  { %v4001_v11 = vpop.f32.mrf.mxu0 }
 0x29f   :  { %v4004_v13 = vpop.f32.mrf.mxu0 }
 0x2a1   :  { %v4007_v15 = vpop.f32.mrf.mxu0 }
 0x2a3   :  { %v4010_v17 = vpop.f32.mrf.mxu0 }
 0x2a4   :  { %v696_v14 = vadd.f32 %v4010_v17, %v2379_v39  ;;  %v676_v17 = vadd.f32 %v3998_v10, %v2379_v39  ;;  %v836_v10 = vld [vmem:[#allocation2 + $0x380] sm:$0xff] }
 0x2a5   :  { %v4013_v19 = vpop.f32.mrf.mxu0  ;;  %3174 = vmatpush3.msra.mxu0 %v836_v10  ;;  %v1260_v10 = vld [vmem:[#allocation2 + $0x228] sm:$0xff] }
 0x2a6   :  { %v691_v18 = vadd.f32 %v2379_v39, %v4013_v19  ;;  %v754_v22 = vmax.f32 %v696_v14, 0.0  ;;  %v671_v19 = vadd.f32 %v2379_v39, %v4001_v11  ;;  %v1084_v11 = vld [vmem:[#allocation2 + $0xf8] sm:$0xff] }
 0x2a7   :  { %v3095_v21 = vpop.f32.mrf.mxu0  ;;  %3234 = vmatprep.subr.mxu0 %v1084_v11 }
 0x2a8   :  { %v706_v8 = vadd.f32 %v3095_v21, %v2379_v39  ;;  %v686_v21 = vadd.f32 %v4004_v13, %v2379_v39  ;;  %v753_v24 = vmax.f32 %v691_v18, 0.0  ;;  %v750_v13 = vmax.f32 %v676_v17, 0.0  ;;  %v1266_v17 = vld [vmem:[#allocation2 + $0x258] sm:$0xff] }
 0x2a9   :  { %v700_v23 = vpop.f32.mrf.mxu0 }
 0x2aa   :  { %v701_v2 = vadd.f32 %v2379_v39, %v700_v23  ;;  %v756_v16 = vmax.f32 %v706_v8, 0.0  ;;  %v681_v23 = vadd.f32 %v2379_v39, %v4007_v15  ;;  %v749_v15 = vmax.f32 %v671_v19, 0.0  ;;  %v1264_v19 = vld [vmem:[#allocation2 + $0x248] sm:$0xff] }
 0x2ab   :  { %v3098_v25 = vpop.f32.mrf.mxu0 }
 0x2ac   :  { %v716_v4 = vadd.f32 %v3098_v25, %v2379_v39  ;;  %v755_v20 = vmax.f32 %v701_v2, 0.0  ;;  %v752_v25 = vmax.f32 %v686_v21, 0.0  ;;  %v751_v26 = vmax.f32 %v681_v23, 0.0  ;;  %v1270_v21 = vld [vmem:[#allocation2 + $0x278] sm:$0xff]  ;;  %v1268_v23 = vld [vmem:[#allocation2 + $0x268] sm:$0xff] }
 0x2ad   :  { %v710_v27 = vpop.f32.mrf.mxu0 }
 0x2ae   :  { %v711_v6 = vadd.f32 %v2379_v39, %v710_v27  ;;  %v758_v9 = vmax.f32 %v716_v4, 0.0 }
 0x2af   :  { %v3101_v29 = vpop.f32.mrf.mxu0 }
 0x2b0   :  { %v726_v61 = vadd.f32 %v3101_v29, %v2379_v39  ;;  %v757_v12 = vmax.f32 %v711_v6, 0.0 }
 0x2b1   :  { %v720_v33 = vpop.f32.mrf.mxu0 }
 0x2b2   :  { %v721_v1 = vadd.f32 %v2379_v39, %v720_v33  ;;  %v760_v5 = vmax.f32 %v726_v61, 0.0  ;;  %v1081_v33 = vld [vmem:[#allocation2 + $0xe0] sm:$0xff] }
 0x2b3   :  { %v3104_v35 = vpop.f32.mrf.mxu0 }
 0x2b4   :  { %v736_v51 = vadd.f32 %v3104_v35, %v2379_v39  ;;  %v759_v7 = vmax.f32 %v721_v1, 0.0  ;;  %v1079_v35 = vld [vmem:[#allocation2 + $0xd0] sm:$0xff] }
 0x2b5   :  { %v730_v36 = vpop.f32.mrf.mxu0 }
 0x2b6   :  { %v731_v59 = vadd.f32 %v2379_v39, %v730_v36  ;;  %v762_v62 = vmax.f32 %v736_v51, 0.0  ;;  %v1078_v36 = vld [vmem:[#allocation2 + $0xc8] sm:$0xff]  ;;  %v1073_v51 = vld [vmem:[#allocation2 + $0xa0] sm:$0xff] }
 0x2b7   :  { %v3107_v42 = vpop.f32.mrf.mxu0 }
 0x2b8   :  { %v746_v45 = vadd.f32 %v3107_v42, %v2379_v39  ;;  %v761_v3 = vmax.f32 %v731_v59, 0.0  ;;  %v1076_v42 = vld [vmem:[#allocation2 + $0xb8] sm:$0xff]  ;;  %v1070_v59 = vld [vmem:[#allocation2 + $0x88] sm:$0xff] }
 0x2b9   :  { %v740_v48 = vpop.f32.mrf.mxu0 }
 0x2ba   :  { %v764_v54 = vmax.f32 %v746_v45, 0.0  ;;  %v741_v58 = vadd.f32 %v2379_v39, %v740_v48  ;;  %v1077_v39 = vld [vmem:[#allocation2 + $0xc0] sm:$0xff]  ;;  %v1075_v45 = vld [vmem:[#allocation2 + $0xb0] sm:$0xff]  ;;  %v1074_v48 = vld [vmem:[#allocation2 + $0xa8] sm:$0xff] }
 0x2bc   :  { %v763_v60 = vmax.f32 %v741_v58, 0.0  ;;  %3109 = vmatpush3.msra.mxu1 %v764_v54  ;;  %v1071_v58 = vld [vmem:[#allocation2 + $0x90] sm:$0xff] }
 0x2bd   :  { %3110 = vmatprep.subr.mxu1 %v3719_v0 }
 0x2be   :  { %3111 = vmatpush3.msra.mxu1 %v763_v60 }
 0x2bf   :  { %3112 = vmatprep.subr.mxu1 %v3719_v0 }
 0x2c0   :  { %3113 = vmatpush3.msra.mxu1 %v762_v62 }
 0x2c1   :  { %3114 = vmatprep.subr.mxu1 %v3719_v0 }
 0x2c2   :  { %3115 = vmatpush3.msra.mxu1 %v761_v3 }
 0x2c3   :  { %3116 = vmatprep.subr.mxu1 %v3719_v0 }
 0x2c4   :  { %3117 = vmatpush3.msra.mxu1 %v760_v5 }
 0x2c5   :  { %3118 = vmatprep.subr.mxu1 %v3719_v0 }
 0x2c6   :  { %3119 = vmatpush3.msra.mxu1 %v759_v7 }
 0x2c7   :  { %3120 = vmatprep.subr.mxu1 %v3719_v0 }
 0x2c8   :  { %3121 = vmatpush3.msra.mxu1 %v758_v9 }
 0x2c9   :  { %3122 = vmatprep.subr.mxu1 %v3719_v0 }
 0x2ca   :  { %3123 = vmatpush3.msra.mxu1 %v757_v12 }
 0x2cb   :  { %3124 = vmatprep.subr.mxu1 %v3719_v0 }
 0x2cc   :  { %3125 = vmatpush3.msra.mxu1 %v756_v16 }
 0x2cd   :  { %3126 = vmatprep.subr.mxu1 %v3719_v0 }
 0x2ce   :  { %3127 = vmatpush3.msra.mxu1 %v755_v20 }
 0x2cf   :  { %3128 = vmatprep.subr.mxu1 %v3719_v0 }
 0x2d0   :  { %3129 = vmatpush3.msra.mxu1 %v754_v22 }
 0x2d1   :  { %3130 = vmatprep.subr.mxu1 %v3719_v0 }
 0x2d2   :  { %3131 = vmatpush3.msra.mxu1 %v753_v24 }
 0x2d3   :  { %3132 = vmatprep.subr.mxu1 %v3719_v0 }
 0x2d4   :  { %3133 = vmatpush3.msra.mxu1 %v752_v25 }
 0x2d5   :  { %3134 = vmatprep.subr.mxu1 %v3719_v0 }
 0x2d6   :  { %3135 = vmatpush3.msra.mxu1 %v751_v26 }
 0x2d7   :  { %3136 = vmatprep.subr.mxu1 %v3719_v0 }
 0x2d8   :  { %3137 = vmatpush3.msra.mxu1 %v750_v13 }
 0x2d9   :  { %3138 = vmatprep.subr.mxu1 %v3719_v0 }
 0x2da   :  { %3139 = vmatpush3.msra.mxu1 %v749_v15 }
 0x2db   :  { %3141 = vmatmul.mubr.f32.vlgmr.msra.gmra.mxu1 %v3879_v30  ;;  %3178 = vmatprep.subr.mxu1 %v764_v54 }
 0x2dc   :  { %3179 = vmatpush3.msra.mxu1 %v764_v54  ;;  %3210 = vmatprep.mubr.f32.mxu1 %v3882_v32  ;;  %v1072_v54 = vld [vmem:[#allocation2 + $0x98] sm:$0xff] }
 0x2dd   :  { %3180 = vmatprep.subr.mxu1 %v763_v60 }
 0x2de   :  { %3181 = vmatpush3.msra.mxu1 %v763_v60  ;;  %v1069_v60 = vld [vmem:[#allocation2 + $0x80] sm:$0xff] }
 0x2df   :  { %3182 = vmatprep.subr.mxu1 %v762_v62 }
 0x2e0   :  { %3183 = vmatpush3.msra.mxu1 %v762_v62 }
 0x2e1   :  { %3184 = vmatprep.subr.mxu1 %v761_v3 }
 0x2e2   :  { %3185 = vmatpush3.msra.mxu1 %v761_v3 }
 0x2e3   :  { %3186 = vmatprep.subr.mxu1 %v760_v5 }
 0x2e4   :  { %3187 = vmatpush3.msra.mxu1 %v760_v5 }
 0x2e5   :  { %3188 = vmatprep.subr.mxu1 %v759_v7 }
 0x2e6   :  { %3189 = vmatpush3.msra.mxu1 %v759_v7 }
 0x2e7   :  { %3190 = vmatprep.subr.mxu1 %v758_v9 }
 0x2e8   :  { %3191 = vmatpush3.msra.mxu1 %v758_v9 }
 0x2e9   :  { %3192 = vmatprep.subr.mxu1 %v757_v12 }
 0x2ea   :  { %3193 = vmatpush3.msra.mxu1 %v757_v12 }
 0x2eb   :  { %3194 = vmatprep.subr.mxu1 %v756_v16 }
 0x2ec   :  { %3195 = vmatpush3.msra.mxu1 %v756_v16 }
 0x2ed   :  { %3196 = vmatprep.subr.mxu1 %v755_v20 }
 0x2ee   :  { %3197 = vmatpush3.msra.mxu1 %v755_v20 }
 0x2ef   :  { %3198 = vmatprep.subr.mxu1 %v754_v22 }
 0x2f0   :  { %3199 = vmatpush3.msra.mxu1 %v754_v22  ;;  %v1269_v22 = vld [vmem:[#allocation2 + $0x270] sm:$0xff] }
 0x2f1   :  { %3200 = vmatprep.subr.mxu1 %v753_v24 }
 0x2f2   :  { %3201 = vmatpush3.msra.mxu1 %v753_v24  ;;  %v1267_v24 = vld [vmem:[#allocation2 + $0x260] sm:$0xff] }
 0x2f3   :  { %3202 = vmatprep.subr.mxu1 %v752_v25 }
 0x2f4   :  { %3203 = vmatpush3.msra.mxu1 %v752_v25  ;;  %v1265_v25 = vld [vmem:[#allocation2 + $0x250] sm:$0xff] }
 0x2f5   :  { %3204 = vmatprep.subr.mxu1 %v751_v26 }
 0x2f6   :  { %3205 = vmatpush3.msra.mxu1 %v751_v26  ;;  %v1263_v26 = vld [vmem:[#allocation2 + $0x240] sm:$0xff] }
 0x2f7   :  { %3206 = vmatprep.subr.mxu1 %v750_v13 }
 0x2f8   :  { %3207 = vmatpush3.msra.mxu1 %v750_v13  ;;  %v1262_v13 = vld [vmem:[#allocation2 + $0x238] sm:$0xff] }
 0x2f9   :  { %3208 = vmatprep.subr.mxu1 %v749_v15 }
 0x2fa   :  { %3209 = vmatpush3.msra.mxu1 %v749_v15  ;;  %v1261_v15 = vld [vmem:[#allocation2 + $0x230] sm:$0xff] }
 0x2fb   :  { %3211 = vmatmul.mubr.f32.vlgmr.msra.gmra.mxu1 %v3923_v37  ;;  %3290 = vmatprep.subr.mxu1 %v1270_v21 }
 0x2fc   :  { %3213 = vmatprep.mubr.f32.mxu1 %v3925_v38  ;;  %3291 = vmatpush3.msra.mxu1 %v1270_v21 }
 0x2fd   :  { %3292 = vmatprep.subr.mxu1 %v1269_v22 }
 0x2fe   :  { %3293 = vmatpush3.msra.mxu1 %v1269_v22 }
 0x2ff   :  { %3214 = vmatmul.mubr.f32.gmra.mxu1 %v3931_v40  ;;  %3294 = vmatprep.subr.mxu1 %v1268_v23 }
 0x300   :  { %3216 = vmatprep.mubr.f32.mxu1 %v3934_v41  ;;  %3295 = vmatpush3.msra.mxu1 %v1268_v23 }
 0x301   :  { %3296 = vmatprep.subr.mxu1 %v1267_v24 }
 0x302   :  { %3297 = vmatpush3.msra.mxu1 %v1267_v24 }
 0x303   :  { %3217 = vmatmul.mubr.f32.gmra.mxu1 %v3940_v43  ;;  %3298 = vmatprep.subr.mxu1 %v1266_v17 }
 0x304   :  { %3219 = vmatprep.mubr.f32.mxu1 %v3943_v44  ;;  %3299 = vmatpush3.msra.mxu1 %v1266_v17 }
 0x305   :  { %3300 = vmatprep.subr.mxu1 %v1265_v25 }
 0x306   :  { %3301 = vmatpush3.msra.mxu1 %v1265_v25 }
 0x307   :  { %3220 = vmatmul.mubr.f32.gmra.mxu1 %v3949_v46  ;;  %3302 = vmatprep.subr.mxu1 %v1264_v19 }
 0x308   :  { %3222 = vmatprep.mubr.f32.mxu1 %v3952_v47  ;;  %3303 = vmatpush3.msra.mxu1 %v1264_v19 }
 0x309   :  { %3304 = vmatprep.subr.mxu1 %v1263_v26 }
 0x30a   :  { %3305 = vmatpush3.msra.mxu1 %v1263_v26 }
 0x30b   :  { %3223 = vmatmul.mubr.f32.gmra.mxu1 %v3958_v49  ;;  %3306 = vmatprep.subr.mxu1 %v1262_v13 }
 0x30c   :  { %3225 = vmatprep.mubr.f32.mxu1 %v3961_v50  ;;  %3307 = vmatpush3.msra.mxu1 %v1262_v13 }
 0x30d   :  { %3308 = vmatprep.subr.mxu1 %v1261_v15 }
 0x30e   :  { %3309 = vmatpush3.msra.mxu1 %v1261_v15 }
 0x30f   :  { %3226 = vmatmul.mubr.f32.gmra.mxu1 %v3967_v52  ;;  %3310 = vmatprep.subr.mxu1 %v1260_v10 }
 0x310   :  { %3228 = vmatprep.mubr.f32.mxu1 %v3970_v53  ;;  %3311 = vmatpush3.msra.mxu1 %v1260_v10 }
 0x313   :  { %3229 = vmatmul.mubr.f32.gmra.mxu1 %v3976_v55 }
 0x314   :  { %3231 = vmatprep.mubr.f32.mxu1 %v3979_v56 }
 0x317   :  { %3232 = vmatmul.mubr.f32.gmra.mxu1 %v3982_v57 }
 0x39b   :  { %v831_v27 = vpop.f32.mrf.mxu1 }
 0x39c   :  { %3176 = vmatmul.mubr.f32.vlgmr.msra.gmra.mxu0 %v831_v27  ;;  %v1258_v27 = vld [vmem:[#allocation2 + $0x218] sm:$0xff] }
 0x39d   :  { %v3142_v29 = vpop.f32.mrf.mxu1  ;;  %3235 = vmatpush3.msra.mxu0 %v1084_v11  ;;  %v1259_v11 = vld [vmem:[#allocation2 + $0x220] sm:$0xff] }
 0x39e   :  { %3236 = vmatprep.subr.mxu0 %v1083_v28  ;;  %3312 = vmatprep.subr.mxu1 %v1259_v11  ;;  %v1256_v29 = vld [vmem:[#allocation2 + $0x208] sm:$0xff] }
 0x39f   :  { %3237 = vmatpush3.msra.mxu0 %v1083_v28  ;;  %3313 = vmatpush3.msra.mxu1 %v1259_v11  ;;  %v1257_v28 = vld [vmem:[#allocation2 + $0x210] sm:$0xff] }
 0x3a0   :  { %3238 = vmatprep.subr.mxu0 %v1082_v31  ;;  %3314 = vmatprep.subr.mxu1 %v1258_v27 }
 0x3a1   :  { %3239 = vmatpush3.msra.mxu0 %v1082_v31  ;;  %3315 = vmatpush3.msra.mxu1 %v1258_v27  ;;  %v1255_v31 = vld [vmem:[#allocation2 + $0x200] sm:$0xff] }
 0x3a2   :  { %3240 = vmatprep.subr.mxu0 %v1081_v33  ;;  %3316 = vmatprep.subr.mxu1 %v1257_v28 }
 0x3a3   :  { %3241 = vmatpush3.msra.mxu0 %v1081_v33  ;;  %3317 = vmatpush3.msra.mxu1 %v1257_v28  ;;  %v2376_v33 = vld [vmem:[%s4229_s4 + $0x6] ss:$0 sm:$0xff] }
 0x3a4   :  { %3242 = vmatprep.subr.mxu0 %v1080_v34  ;;  %3318 = vmatprep.subr.mxu1 %v1256_v29 }
 0x3a5   :  { %3243 = vmatpush3.msra.mxu0 %v1080_v34  ;;  %3319 = vmatpush3.msra.mxu1 %v1256_v29  ;;  %v249_v34 = vadd.f32 %v2376_v33, %v3990_v63 }
 0x3a6   :  { %3244 = vmatprep.subr.mxu0 %v1079_v35  ;;  %3320 = vmatprep.subr.mxu1 %v1255_v31 }
 0x3a7   :  { %3245 = vmatpush3.msra.mxu0 %v1079_v35  ;;  %3321 = vmatpush3.msra.mxu1 %v1255_v31 }
 0x3a8   :  { %3246 = vmatprep.subr.mxu0 %v1078_v36  ;;  %3381 = vmatprep.subr.mxu1 %v3719_v0 }
 0x3a9   :  { %3247 = vmatpush3.msra.mxu0 %v1078_v36 }
 0x3aa   :  { %3248 = vmatprep.subr.mxu0 %v1077_v39 }
 0x3ab   :  { %3249 = vmatpush3.msra.mxu0 %v1077_v39 }
 0x3ac   :  { %3250 = vmatprep.subr.mxu0 %v1076_v42 }
 0x3ad   :  { %3251 = vmatpush3.msra.mxu0 %v1076_v42  ;;  %v2381_v42 = vld [vmem:[%s4229_s4 + $0x1] ss:$0 sm:$0xff] }
 0x3ae   :  { %3252 = vmatprep.subr.mxu0 %v1075_v45 }
 0x3af   :  { %3253 = vmatpush3.msra.mxu0 %v1075_v45 }
 0x3b0   :  { %3254 = vmatprep.subr.mxu0 %v1074_v48 }
 0x3b1   :  { %3255 = vmatpush3.msra.mxu0 %v1074_v48 }
 0x3b2   :  { %3256 = vmatprep.subr.mxu0 %v1073_v51 }
 0x3b3   :  { %3257 = vmatpush3.msra.mxu0 %v1073_v51 }
 0x3b4   :  { %3258 = vmatprep.subr.mxu0 %v1072_v54 }
 0x3b5   :  { %3259 = vmatpush3.msra.mxu0 %v1072_v54 }
 0x3b6   :  { %3260 = vmatprep.subr.mxu0 %v1071_v58 }
 0x3b7   :  { %3261 = vmatpush3.msra.mxu0 %v1071_v58 }
 0x3b8   :  { %3262 = vmatprep.subr.mxu0 %v1070_v59 }
 0x3b9   :  { %3263 = vmatpush3.msra.mxu0 %v1070_v59 }
 0x3ba   :  { %3264 = vmatprep.subr.mxu0 %v1069_v60 }
 0x3bb   :  { %v3212_v61 = vpop.f32.mrf.mxu1  ;;  %3265 = vmatpush3.msra.mxu0 %v1069_v60 }
 0x3bc   :  { %3346 = vmatprep.subr.mxu0 %v3719_v0 }
 0x3bd   :  { %v989_v62 = vpop.f32.mrf.mxu1 }
 0x3be   :  { %3266 = vmatprep.mubr.f32.mxu0 %v989_v62 }
 0x3bf   :  { %v3215_v1 = vpop.f32.mrf.mxu1  ;;  %3267 = vmatmul.mubr.f32.vlgmr.msra.gmra.mxu0 %v3212_v61 }
 0x3c1   :  { %v999_v3 = vpop.f32.mrf.mxu1 }
 0x3c2   :  { %3269 = vmatprep.mubr.f32.mxu0 %v999_v3 }
 0x3c3   :  { %v3218_v4 = vpop.f32.mrf.mxu1  ;;  %3270 = vmatmul.mubr.f32.gmra.mxu0 %v3215_v1 }
 0x3c5   :  { %v1009_v5 = vpop.f32.mrf.mxu1 }
 0x3c6   :  { %3272 = vmatprep.mubr.f32.mxu0 %v1009_v5 }
 0x3c7   :  { %v3221_v6 = vpop.f32.mrf.mxu1  ;;  %3273 = vmatmul.mubr.f32.gmra.mxu0 %v3218_v4 }
 0x3c9   :  { %v1019_v7 = vpop.f32.mrf.mxu1 }
 0x3ca   :  { %3275 = vmatprep.mubr.f32.mxu0 %v1019_v7 }
 0x3cb   :  { %v3224_v8 = vpop.f32.mrf.mxu1  ;;  %3276 = vmatmul.mubr.f32.gmra.mxu0 %v3221_v6 }
 0x3cd   :  { %v1029_v9 = vpop.f32.mrf.mxu1 }
 0x3ce   :  { %3278 = vmatprep.mubr.f32.mxu0 %v1029_v9 }
 0x3cf   :  { %v3227_v2 = vpop.f32.mrf.mxu1  ;;  %3279 = vmatmul.mubr.f32.gmra.mxu0 %v3224_v8 }
 0x3d1   :  { %v1039_v12 = vpop.f32.mrf.mxu1 }
 0x3d2   :  { %3281 = vmatprep.mubr.f32.mxu0 %v1039_v12 }
 0x3d3   :  { %v3230_v14 = vpop.f32.mrf.mxu1  ;;  %3282 = vmatmul.mubr.f32.gmra.mxu0 %v3227_v2 }
 0x3d5   :  { %v1049_v16 = vpop.f32.mrf.mxu1 }
 0x3d6   :  { %3284 = vmatprep.mubr.f32.mxu0 %v1049_v16 }
 0x3d7   :  { %v3233_v18 = vpop.f32.mrf.mxu1  ;;  %3285 = vmatmul.mubr.f32.gmra.mxu0 %v3230_v14 }
 0x3d9   :  { %v1059_v20 = vpop.f32.mrf.mxu1 }
 0x3da   :  { %3287 = vmatprep.mubr.f32.mxu0 %v1059_v20 }
 0x3db   :  { %3288 = vmatmul.mubr.f32.gmra.mxu0 %v3233_v18 }
 0x3dc   :  { %3378 = vmatprep.mubr.msk.f32.mxu0 %vm3720_vm0, %v3719_v0 }
 0x45c   :  { %v918_v35 = vpop.f32.mrf.mxu0 }
 0x45d   :  { %v4073_v36 = vadd.f32 %v918_v35, %v249_v34 }
 0x45e   :  { %v3177_v39 = vpop.f32.mrf.mxu0 }
 0x47f   :  { %v3268_v45 = vpop.f32.mrf.mxu0 }
 0x480   :  { %v1165_v48 = vadd.f32 %v3268_v45, %v2381_v42 }
 0x481   :  { %v1159_v51 = vpop.f32.mrf.mxu0 }
 0x482   :  { %v1160_v54 = vadd.f32 %v2381_v42, %v1159_v51  ;;  %v1239_v60 = vmax.f32 %v1165_v48, 0.0 }
 0x483   :  { %v3271_v58 = vpop.f32.mrf.mxu0 }
 0x484   :  { %v1238_v59 = vmax.f32 %v1160_v54, 0.0  ;;  %v1175_v61 = vadd.f32 %v3271_v58, %v2381_v42  ;;  %v1526_v58 = vld [vmem:[#allocation2 + $0x478] sm:$0xff] }
 0x485   :  { %v1169_v62 = vpop.f32.mrf.mxu0 }
 0x486   :  { %v1170_v1 = vadd.f32 %v2381_v42, %v1169_v62  ;;  %3322 = vmatprep.mubr.f32.mxu1 %v1238_v59  ;;  %v1241_v4 = vmax.f32 %v1175_v61, 0.0  ;;  %v1525_v59 = vld [vmem:[#allocation2 + $0x470] sm:$0xff] }
 0x487   :  { %v3274_v63 = vpop.f32.mrf.mxu0  ;;  %3323 = vmatmul.mubr.f32.vlgmr.msra.gmra.mxu1 %v1239_v60  ;;  %v1524_v60 = vld [vmem:[#allocation2 + $0x468] sm:$0xff] }
 0x488   :  { %v1240_v3 = vmax.f32 %v1170_v1, 0.0  ;;  %v1185_v5 = vadd.f32 %v3274_v63, %v2381_v42  ;;  %3382 = vmatpush3.msra.mxu1 %v1526_v58  ;;  %v1522_v1 = vld [vmem:[#allocation2 + $0x458] sm:$0xff] }
 0x489   :  { %v1179_v6 = vpop.f32.mrf.mxu0  ;;  %3383 = vmatprep.subr.mxu1 %v3719_v0 }
 0x48a   :  { %v1180_v7 = vadd.f32 %v2381_v42, %v1179_v6  ;;  %3325 = vmatprep.mubr.f32.mxu1 %v1240_v3  ;;  %v1243_v2 = vmax.f32 %v1185_v5, 0.0  ;;  %3384 = vmatpush3.msra.mxu1 %v1525_v59  ;;  %v1521_v3 = vld [vmem:[#allocation2 + $0x450] sm:$0xff]  ;;  %v1520_v5 = vld [vmem:[#allocation2 + $0x448] sm:$0xff] }
 0x48b   :  { %v3277_v8 = vpop.f32.mrf.mxu0  ;;  %3326 = vmatmul.mubr.f32.gmra.mxu1 %v1241_v4  ;;  %3385 = vmatprep.subr.mxu1 %v3719_v0 }
 0x48c   :  { %v1242_v9 = vmax.f32 %v1180_v7, 0.0  ;;  %v1195_v12 = vadd.f32 %v3277_v8, %v2381_v42  ;;  %3386 = vmatpush3.msra.mxu1 %v1524_v60  ;;  %v1519_v7 = vld [vmem:[#allocation2 + $0x440] sm:$0xff] }
 0x48d   :  { %v1189_v14 = vpop.f32.mrf.mxu0  ;;  %3387 = vmatprep.subr.mxu1 %v3719_v0 }
 0x48e   :  { %v1190_v16 = vadd.f32 %v2381_v42, %v1189_v14  ;;  %3328 = vmatprep.mubr.f32.mxu1 %v1242_v9  ;;  %v1245_v21 = vmax.f32 %v1195_v12, 0.0  ;;  %v1518_v9 = vld [vmem:[#allocation2 + $0x438] sm:$0xff]  ;;  %v1517_v12 = vld [vmem:[#allocation2 + $0x430] sm:$0xff] }
 0x48f   :  { %v3280_v18 = vpop.f32.mrf.mxu0  ;;  %3329 = vmatmul.mubr.f32.gmra.mxu1 %v1243_v2 }
 0x490   :  { %v1244_v20 = vmax.f32 %v1190_v16, 0.0  ;;  %v1205_v22 = vadd.f32 %v3280_v18, %v2381_v42  ;;  %v1516_v16 = vld [vmem:[#allocation2 + $0x428] sm:$0xff] }
 0x491   :  { %v1199_v23 = vpop.f32.mrf.mxu0 }
 0x492   :  { %v1200_v24 = vadd.f32 %v2381_v42, %v1199_v23  ;;  %3331 = vmatprep.mubr.f32.mxu1 %v1244_v20  ;;  %v1247_v19 = vmax.f32 %v1205_v22, 0.0  ;;  %v1515_v20 = vld [vmem:[#allocation2 + $0x420] sm:$0xff]  ;;  %v1514_v22 = vld [vmem:[#allocation2 + $0x418] sm:$0xff] }
 0x493   :  { %v3283_v17 = vpop.f32.mrf.mxu0  ;;  %3332 = vmatmul.mubr.f32.gmra.mxu1 %v1245_v21 }
 0x494   :  { %v1246_v25 = vmax.f32 %v1200_v24, 0.0  ;;  %v1215_v26 = vadd.f32 %v3283_v17, %v2381_v42  ;;  %v1513_v24 = vld [vmem:[#allocation2 + $0x410] sm:$0xff] }
 0x495   :  { %v1209_v13 = vpop.f32.mrf.mxu0 }
 0x496   :  { %v1210_v15 = vadd.f32 %v2381_v42, %v1209_v13  ;;  %3334 = vmatprep.mubr.f32.mxu1 %v1246_v25  ;;  %v1249_v27 = vmax.f32 %v1215_v26, 0.0  ;;  %v1512_v25 = vld [vmem:[#allocation2 + $0x408] sm:$0xff]  ;;  %v2383_v13 = vld [vmem:[%s4229_s4 + $0x4] ss:$0 sm:$0xff] }
 0x497   :  { %v3286_v10 = vpop.f32.mrf.mxu0  ;;  %3335 = vmatmul.mubr.f32.gmra.mxu1 %v1247_v19 }
 0x498   :  { %v1248_v11 = vmax.f32 %v1210_v15, 0.0  ;;  %v1225_v28 = vadd.f32 %v3286_v10, %v2381_v42 }
 0x499   :  { %v1219_v29 = vpop.f32.mrf.mxu0 }
 0x49a   :  { %v1220_v31 = vadd.f32 %v2381_v42, %v1219_v29  ;;  %3337 = vmatprep.mubr.f32.mxu1 %v1248_v11  ;;  %v1251_v35 = vmax.f32 %v1225_v28, 0.0 }
 0x49b   :  { %v3289_v33 = vpop.f32.mrf.mxu0  ;;  %3338 = vmatmul.mubr.f32.gmra.mxu1 %v1249_v27 }
 0x49c   :  { %v1250_v34 = vmax.f32 %v1220_v31, 0.0  ;;  %v1235_v39 = vadd.f32 %v3289_v33, %v2381_v42 }
 0x49d   :  { %v1229_v45 = vpop.f32.mrf.mxu0 }
 0x49e   :  { %v1230_v48 = vadd.f32 %v2381_v42, %v1229_v45  ;;  %3340 = vmatprep.mubr.f32.mxu1 %v1250_v34  ;;  %v1253_v54 = vmax.f32 %v1235_v39, 0.0  ;;  %v1523_v42 = vld [vmem:[#allocation2 + $0x460] sm:$0xff] }
 0x49f   :  { %3341 = vmatmul.mubr.f32.gmra.mxu1 %v1251_v35 }
 0x4a0   :  { %v1252_v51 = vmax.f32 %v1230_v48, 0.0  ;;  %3388 = vmatpush3.msra.mxu1 %v1523_v42 }
 0x4a1   :  { %3389 = vmatprep.subr.mxu1 %v3719_v0 }
 0x4a2   :  { %3343 = vmatprep.mubr.f32.mxu1 %v1252_v51  ;;  %3390 = vmatpush3.msra.mxu1 %v1522_v1 }
 0x4a3   :  { %3344 = vmatmul.mubr.f32.gmra.mxu1 %v1253_v54  ;;  %3391 = vmatprep.subr.mxu1 %v3719_v0 }
 0x4a4   :  { %3413 = vmatprep.mubr.msk.f32.mxu1 %vm3720_vm0, %v3719_v0  ;;  %3392 = vmatpush3.msra.mxu1 %v1521_v3 }
 0x4a5   :  { %3393 = vmatprep.subr.mxu1 %v3719_v0 }
 0x4a6   :  { %3394 = vmatpush3.msra.mxu1 %v1520_v5 }
 0x4a7   :  { %3395 = vmatprep.subr.mxu1 %v3719_v0 }
 0x4a8   :  { %3396 = vmatpush3.msra.mxu1 %v1519_v7 }
 0x4a9   :  { %3397 = vmatprep.subr.mxu1 %v3719_v0 }
 0x4aa   :  { %3398 = vmatpush3.msra.mxu1 %v1518_v9 }
 0x4ab   :  { %3399 = vmatprep.subr.mxu1 %v3719_v0 }
 0x4ac   :  { %3400 = vmatpush3.msra.mxu1 %v1517_v12 }
 0x4ad   :  { %3401 = vmatprep.subr.mxu1 %v3719_v0 }
 0x4ae   :  { %3402 = vmatpush3.msra.mxu1 %v1516_v16 }
 0x4af   :  { %3403 = vmatprep.subr.mxu1 %v3719_v0 }
 0x4b0   :  { %3404 = vmatpush3.msra.mxu1 %v1515_v20 }
 0x4b1   :  { %3405 = vmatprep.subr.mxu1 %v3719_v0 }
 0x4b2   :  { %3406 = vmatpush3.msra.mxu1 %v1514_v22 }
 0x4b3   :  { %3407 = vmatprep.subr.mxu1 %v3719_v0 }
 0x4b4   :  { %3408 = vmatpush3.msra.mxu1 %v1513_v24 }
 0x4b5   :  { %3409 = vmatprep.subr.mxu1 %v3719_v0 }
 0x4b6   :  { %3410 = vmatpush3.msra.mxu1 %v1512_v25 }
 0x4b7   :  { %3411 = vmatprep.subr.mxu1 %v3719_v0 }
 0x547   :  { %v4081_v61 = vpop.f32.mrf.mxu1 }
 0x549   :  { %v4084_v62 = vpop.f32.mrf.mxu1 }
 0x54b   :  { %v4087_v63 = vpop.f32.mrf.mxu1 }
 0x54d   :  { %v4090_v4 = vpop.f32.mrf.mxu1 }
 0x54f   :  { %v4093_v6 = vpop.f32.mrf.mxu1 }
 0x550   :  { %v1371_v3 = vadd.f32 %v4093_v6, %v2383_v13  ;;  %v1351_v6 = vadd.f32 %v4081_v61, %v2383_v13  ;;  %v1746_v61 = vld [vmem:[#allocation2 + $0x110] sm:$0xff] }
 0x551   :  { %v4096_v8 = vpop.f32.mrf.mxu1 }
 0x552   :  { %v1366_v7 = vadd.f32 %v2383_v13, %v4096_v8  ;;  %v1429_v12 = vmax.f32 %v1371_v3, 0.0  ;;  %v1346_v8 = vadd.f32 %v2383_v13, %v4084_v62  ;;  %v1745_v62 = vld [vmem:[#allocation2 + $0x108] sm:$0xff]  ;;  %v1933_v3 = vld [vmem:[#allocation2 + $0x298] sm:$0xff] }
 0x553   :  { %v3333_v2 = vpop.f32.mrf.mxu1 }
 0x554   :  { %v1381_v59 = vadd.f32 %v3333_v2, %v2383_v13  ;;  %v1361_v2 = vadd.f32 %v4087_v63, %v2383_v13  ;;  %v1428_v16 = vmax.f32 %v1366_v7, 0.0  ;;  %v1425_v63 = vmax.f32 %v1351_v6, 0.0  ;;  %v1931_v7 = vld [vmem:[#allocation2 + $0x288] sm:$0xff] }
 0x555   :  { %v1375_v14 = vpop.f32.mrf.mxu1 }
 0x556   :  { %v1376_v42 = vadd.f32 %v2383_v13, %v1375_v14  ;;  %v1431_v5 = vmax.f32 %v1381_v59, 0.0  ;;  %v1356_v14 = vadd.f32 %v2383_v13, %v4090_v4  ;;  %v1424_v4 = vmax.f32 %v1346_v8, 0.0  ;;  %v1937_v59 = vld [vmem:[#allocation2 + $0x2b8] sm:$0xff] }
 0x557   :  { %v3336_v18 = vpop.f32.mrf.mxu1 }
 0x558   :  { %v1391_v48 = vadd.f32 %v3336_v18, %v2383_v13  ;;  %v1430_v9 = vmax.f32 %v1376_v42, 0.0  ;;  %v1427_v18 = vmax.f32 %v1361_v2, 0.0  ;;  %v1426_v20 = vmax.f32 %v1356_v14, 0.0  ;;  %v1935_v42 = vld [vmem:[#allocation2 + $0x2a8] sm:$0xff] }
 0x559   :  { %v1385_v21 = vpop.f32.mrf.mxu1 }
 0x55a   :  { %v1386_v54 = vadd.f32 %v2383_v13, %v1385_v21  ;;  %v1433_v60 = vmax.f32 %v1391_v48, 0.0  ;;  %v1744_v21 = vld [vmem:[#allocation2 + $0x100] sm:$0xff]  ;;  %v1941_v48 = vld [vmem:[#allocation2 + $0x2d8] sm:$0xff] }
 0x55b   :  { %v3339_v23 = vpop.f32.mrf.mxu1 }
 0x55c   :  { %v1401_v34 = vadd.f32 %v3339_v23, %v2383_v13  ;;  %v1432_v1 = vmax.f32 %v1386_v54, 0.0  ;;  %v1939_v54 = vld [vmem:[#allocation2 + $0x2c8] sm:$0xff] }
 0x55d   :  { %v1395_v17 = vpop.f32.mrf.mxu1 }
 0x55e   :  { %v1396_v39 = vadd.f32 %v2383_v13, %v1395_v17  ;;  %v1435_v51 = vmax.f32 %v1401_v34, 0.0  ;;  %v1945_v34 = vld [vmem:[#allocation2 + $0x2f8] sm:$0xff] }
 0x55f   :  { %v3342_v19 = vpop.f32.mrf.mxu1 }
 0x560   :  { %v1411_v27 = vadd.f32 %v3342_v19, %v2383_v13  ;;  %v1434_v58 = vmax.f32 %v1396_v39, 0.0  ;;  %v1943_v39 = vld [vmem:[#allocation2 + $0x2e8] sm:$0xff] }
 0x561   :  { %v1405_v26 = vpop.f32.mrf.mxu1 }
 0x562   :  { %v1406_v31 = vadd.f32 %v2383_v13, %v1405_v26  ;;  %v1437_v35 = vmax.f32 %v1411_v27, 0.0 }
 0x563   :  { %v3345_v15 = vpop.f32.mrf.mxu1 }
 0x564   :  { %v1421_v10 = vadd.f32 %v3345_v15, %v2383_v13  ;;  %v1436_v45 = vmax.f32 %v1406_v31, 0.0 }
 0x565   :  { %v1415_v11 = vpop.f32.mrf.mxu1 }
 0x566   :  { %v1439_v28 = vmax.f32 %v1421_v10, 0.0  ;;  %v1416_v29 = vadd.f32 %v2383_v13, %v1415_v11 }
 0x568   :  { %v1438_v33 = vmax.f32 %v1416_v29, 0.0  ;;  %3347 = vmatpush3.msra.mxu0 %v1439_v28 }
 0x569   :  { %3348 = vmatprep.subr.mxu0 %v3719_v0 }
 0x56a   :  { %3349 = vmatpush3.msra.mxu0 %v1438_v33 }
 0x56b   :  { %3350 = vmatprep.subr.mxu0 %v3719_v0 }
 0x56c   :  { %3351 = vmatpush3.msra.mxu0 %v1437_v35 }
 0x56d   :  { %3352 = vmatprep.subr.mxu0 %v3719_v0 }
 0x56e   :  { %3353 = vmatpush3.msra.mxu0 %v1436_v45 }
 0x56f   :  { %3354 = vmatprep.subr.mxu0 %v3719_v0 }
 0x570   :  { %3355 = vmatpush3.msra.mxu0 %v1435_v51 }
 0x571   :  { %3356 = vmatprep.subr.mxu0 %v3719_v0 }
 0x572   :  { %3357 = vmatpush3.msra.mxu0 %v1434_v58 }
 0x573   :  { %3358 = vmatprep.subr.mxu0 %v3719_v0 }
 0x574   :  { %3359 = vmatpush3.msra.mxu0 %v1433_v60 }
 0x575   :  { %3360 = vmatprep.subr.mxu0 %v3719_v0 }
 0x576   :  { %3361 = vmatpush3.msra.mxu0 %v1432_v1 }
 0x577   :  { %3362 = vmatprep.subr.mxu0 %v3719_v0 }
 0x578   :  { %3363 = vmatpush3.msra.mxu0 %v1431_v5 }
 0x579   :  { %3364 = vmatprep.subr.mxu0 %v3719_v0 }
 0x57a   :  { %3365 = vmatpush3.msra.mxu0 %v1430_v9 }
 0x57b   :  { %3366 = vmatprep.subr.mxu0 %v3719_v0 }
 0x57c   :  { %3367 = vmatpush3.msra.mxu0 %v1429_v12 }
 0x57d   :  { %3368 = vmatprep.subr.mxu0 %v3719_v0 }
 0x57e   :  { %3369 = vmatpush3.msra.mxu0 %v1428_v16 }
 0x57f   :  { %3370 = vmatprep.subr.mxu0 %v3719_v0 }
 0x580   :  { %3371 = vmatpush3.msra.mxu0 %v1427_v18 }
 0x581   :  { %3372 = vmatprep.subr.mxu0 %v3719_v0 }
 0x582   :  { %3373 = vmatpush3.msra.mxu0 %v1426_v20 }
 0x583   :  { %3374 = vmatprep.subr.mxu0 %v3719_v0 }
 0x584   :  { %3375 = vmatpush3.msra.mxu0 %v1425_v63 }
 0x585   :  { %3376 = vmatprep.subr.mxu0 %v3719_v0 }
 0x586   :  { %3377 = vmatpush3.msra.mxu0 %v1424_v4 }
 0x587   :  { %3379 = vmatmul.mubr.f32.vlgmr.msra.gmra.mxu0 %v3879_v30  ;;  %3416 = vmatprep.subr.mxu0 %v1439_v28 }
 0x588   :  { %3417 = vmatpush3.msra.mxu0 %v1439_v28  ;;  %3448 = vmatprep.mubr.f32.mxu0 %v3882_v32  ;;  %v1511_v32 = vld [vmem:[#allocation2 + $0x400] sm:$0xff] }
 0x589   :  { %3418 = vmatprep.subr.mxu0 %v1438_v33  ;;  %3412 = vmatpush3.msra.mxu1 %v1511_v32 }
 0x58a   :  { %3419 = vmatpush3.msra.mxu0 %v1438_v33 }
 0x58b   :  { %3420 = vmatprep.subr.mxu0 %v1437_v35 }
 0x58c   :  { %3421 = vmatpush3.msra.mxu0 %v1437_v35  ;;  %v1944_v35 = vld [vmem:[#allocation2 + $0x2f0] sm:$0xff] }
 0x58d   :  { %3422 = vmatprep.subr.mxu0 %v1436_v45 }
 0x58e   :  { %3423 = vmatpush3.msra.mxu0 %v1436_v45  ;;  %v1942_v45 = vld [vmem:[#allocation2 + $0x2e0] sm:$0xff] }
 0x58f   :  { %3424 = vmatprep.subr.mxu0 %v1435_v51 }
 0x590   :  { %3425 = vmatpush3.msra.mxu0 %v1435_v51  ;;  %v1940_v51 = vld [vmem:[#allocation2 + $0x2d0] sm:$0xff] }
 0x591   :  { %3426 = vmatprep.subr.mxu0 %v1434_v58 }
 0x592   :  { %3427 = vmatpush3.msra.mxu0 %v1434_v58  ;;  %v1938_v58 = vld [vmem:[#allocation2 + $0x2c0] sm:$0xff] }
 0x593   :  { %3428 = vmatprep.subr.mxu0 %v1433_v60 }
 0x594   :  { %3429 = vmatpush3.msra.mxu0 %v1433_v60  ;;  %v1936_v60 = vld [vmem:[#allocation2 + $0x2b0] sm:$0xff] }
 0x595   :  { %3430 = vmatprep.subr.mxu0 %v1432_v1 }
 0x596   :  { %3431 = vmatpush3.msra.mxu0 %v1432_v1  ;;  %v1934_v1 = vld [vmem:[#allocation2 + $0x2a0] sm:$0xff] }
 0x597   :  { %3432 = vmatprep.subr.mxu0 %v1431_v5 }
 0x598   :  { %3433 = vmatpush3.msra.mxu0 %v1431_v5  ;;  %v1932_v5 = vld [vmem:[#allocation2 + $0x290] sm:$0xff] }
 0x599   :  { %3434 = vmatprep.subr.mxu0 %v1430_v9 }
 0x59a   :  { %3435 = vmatpush3.msra.mxu0 %v1430_v9  ;;  %v1930_v9 = vld [vmem:[#allocation2 + $0x280] sm:$0xff] }
 0x59b   :  { %3436 = vmatprep.subr.mxu0 %v1429_v12 }
 0x59c   :  { %3437 = vmatpush3.msra.mxu0 %v1429_v12 }
 0x59d   :  { %3438 = vmatprep.subr.mxu0 %v1428_v16 }
 0x59e   :  { %3439 = vmatpush3.msra.mxu0 %v1428_v16  ;;  %v2385_v16 = vld [vmem:[%s4229_s4 + $0x2] ss:$0 sm:$0xff] }
 0x59f   :  { %3440 = vmatprep.subr.mxu0 %v1427_v18 }
 0x5a0   :  { %3441 = vmatpush3.msra.mxu0 %v1427_v18 }
 0x5a1   :  { %3442 = vmatprep.subr.mxu0 %v1426_v20 }
 0x5a2   :  { %3443 = vmatpush3.msra.mxu0 %v1426_v20 }
 0x5a3   :  { %3444 = vmatprep.subr.mxu0 %v1425_v63 }
 0x5a4   :  { %3445 = vmatpush3.msra.mxu0 %v1425_v63 }
 0x5a5   :  { %3446 = vmatprep.subr.mxu0 %v1424_v4 }
 0x5a6   :  { %3447 = vmatpush3.msra.mxu0 %v1424_v4 }
 0x5a7   :  { %3449 = vmatmul.mubr.f32.vlgmr.msra.gmra.mxu0 %v3923_v37  ;;  %v1759_v37 = vld [vmem:[#allocation2 + $0x178] sm:$0xff]  ;;  %3528 = vmatprep.subr.mxu0 %v1945_v34 }
 0x5a8   :  { %3451 = vmatprep.mubr.f32.mxu0 %v3925_v38  ;;  %3472 = vmatprep.subr.mxu1 %v1759_v37 }
 0x5a9   :  { %3529 = vmatpush3.msra.mxu0 %v1945_v34 }
 0x5aa   :  { %3530 = vmatprep.subr.mxu0 %v1944_v35 }
 0x5ab   :  { %3452 = vmatmul.mubr.f32.gmra.mxu0 %v3931_v40  ;;  %v1758_v40 = vld [vmem:[#allocation2 + $0x170] sm:$0xff] }
 0x5ac   :  { %3454 = vmatprep.mubr.f32.mxu0 %v3934_v41  ;;  %3531 = vmatpush3.msra.mxu0 %v1944_v35 }
 0x5ad   :  { %3532 = vmatprep.subr.mxu0 %v1943_v39 }
 0x5ae   :  { %3533 = vmatpush3.msra.mxu0 %v1943_v39 }
 0x5af   :  { %3455 = vmatmul.mubr.f32.gmra.mxu0 %v3940_v43  ;;  %v1757_v43 = vld [vmem:[#allocation2 + $0x168] sm:$0xff]  ;;  %3534 = vmatprep.subr.mxu0 %v1942_v45 }
 0x5b0   :  { %3457 = vmatprep.mubr.f32.mxu0 %v3943_v44  ;;  %v1756_v44 = vld [vmem:[#allocation2 + $0x160] sm:$0xff]  ;;  %3535 = vmatpush3.msra.mxu0 %v1942_v45 }
 0x5b1   :  { %3536 = vmatprep.subr.mxu0 %v1941_v48 }
 0x5b2   :  { %3537 = vmatpush3.msra.mxu0 %v1941_v48 }
 0x5b3   :  { %3458 = vmatmul.mubr.f32.gmra.mxu0 %v3949_v46  ;;  %v1755_v46 = vld [vmem:[#allocation2 + $0x158] sm:$0xff]  ;;  %3538 = vmatprep.subr.mxu0 %v1940_v51 }
 0x5b4   :  { %3460 = vmatprep.mubr.f32.mxu0 %v3952_v47  ;;  %v1754_v47 = vld [vmem:[#allocation2 + $0x150] sm:$0xff]  ;;  %3539 = vmatpush3.msra.mxu0 %v1940_v51 }
 0x5b5   :  { %3540 = vmatprep.subr.mxu0 %v1939_v54 }
 0x5b6   :  { %3541 = vmatpush3.msra.mxu0 %v1939_v54  ;;  %v2201_v54 = vld [vmem:[#allocation2 + $0x4f8] sm:$0xff] }
 0x5b7   :  { %3461 = vmatmul.mubr.f32.gmra.mxu0 %v3958_v49  ;;  %v1753_v49 = vld [vmem:[#allocation2 + $0x148] sm:$0xff]  ;;  %3542 = vmatprep.subr.mxu0 %v1938_v58 }
 0x5b8   :  { %3463 = vmatprep.mubr.f32.mxu0 %v3961_v50  ;;  %v1752_v50 = vld [vmem:[#allocation2 + $0x140] sm:$0xff]  ;;  %3543 = vmatpush3.msra.mxu0 %v1938_v58  ;;  %v2200_v58 = vld [vmem:[#allocation2 + $0x4f0] sm:$0xff] }
 0x5b9   :  { %3544 = vmatprep.subr.mxu0 %v1937_v59 }
 0x5ba   :  { %3545 = vmatpush3.msra.mxu0 %v1937_v59  ;;  %v2199_v59 = vld [vmem:[#allocation2 + $0x4e8] sm:$0xff] }
 0x5bb   :  { %3464 = vmatmul.mubr.f32.gmra.mxu0 %v3967_v52  ;;  %v1751_v52 = vld [vmem:[#allocation2 + $0x138] sm:$0xff]  ;;  %3546 = vmatprep.subr.mxu0 %v1936_v60 }
 0x5bc   :  { %3466 = vmatprep.mubr.f32.mxu0 %v3970_v53  ;;  %v1750_v53 = vld [vmem:[#allocation2 + $0x130] sm:$0xff]  ;;  %3547 = vmatpush3.msra.mxu0 %v1936_v60  ;;  %v2198_v60 = vld [vmem:[#allocation2 + $0x4e0] sm:$0xff] }
 0x5bd   :  { %3548 = vmatprep.subr.mxu0 %v1935_v42 }
 0x5be   :  { %3549 = vmatpush3.msra.mxu0 %v1935_v42  ;;  %v2197_v42 = vld [vmem:[#allocation2 + $0x4d8] sm:$0xff] }
 0x5bf   :  { %3467 = vmatmul.mubr.f32.gmra.mxu0 %v3976_v55  ;;  %v1749_v55 = vld [vmem:[#allocation2 + $0x128] sm:$0xff]  ;;  %3550 = vmatprep.subr.mxu0 %v1934_v1 }
 0x5c0   :  { %3469 = vmatprep.mubr.f32.mxu0 %v3979_v56  ;;  %v1748_v56 = vld [vmem:[#allocation2 + $0x120] sm:$0xff]  ;;  %3551 = vmatpush3.msra.mxu0 %v1934_v1  ;;  %v2196_v1 = vld [vmem:[#allocation2 + $0x4d0] sm:$0xff] }
 0x5c1   :  { %3552 = vmatprep.subr.mxu0 %v1933_v3 }
 0x5c2   :  { %3553 = vmatpush3.msra.mxu0 %v1933_v3  ;;  %v2195_v3 = vld [vmem:[#allocation2 + $0x4c8] sm:$0xff] }
 0x5c3   :  { %3470 = vmatmul.mubr.f32.gmra.mxu0 %v3982_v57  ;;  %v1747_v57 = vld [vmem:[#allocation2 + $0x118] sm:$0xff]  ;;  %3554 = vmatprep.subr.mxu0 %v1932_v5 }
 0x5c4   :  { %3555 = vmatpush3.msra.mxu0 %v1932_v5  ;;  %v2194_v5 = vld [vmem:[#allocation2 + $0x4c0] sm:$0xff] }
 0x5c5   :  { %3556 = vmatprep.subr.mxu0 %v1931_v7 }
 0x5c6   :  { %3557 = vmatpush3.msra.mxu0 %v1931_v7  ;;  %v2193_v7 = vld [vmem:[#allocation2 + $0x4b8] sm:$0xff] }
 0x5c7   :  { %3558 = vmatprep.subr.mxu0 %v1930_v9 }
 0x5c8   :  { %3559 = vmatpush3.msra.mxu0 %v1930_v9  ;;  %v2192_v9 = vld [vmem:[#allocation2 + $0x4b0] sm:$0xff] }
 0x5c9   :  { %3619 = vmatprep.subr.mxu0 %v3719_v0 }
 0x647   :  { %v1506_v38 = vpop.f32.mrf.mxu0 }
 0x648   :  { %3414 = vmatmul.mubr.f32.vlgmr.msra.gmra.mxu1 %v1506_v38 }
 0x649   :  { %v3380_v41 = vpop.f32.mrf.mxu0  ;;  %3473 = vmatpush3.msra.mxu1 %v1759_v37 }
 0x64a   :  { %3474 = vmatprep.subr.mxu1 %v1758_v40 }
 0x64b   :  { %3475 = vmatpush3.msra.mxu1 %v1758_v40 }
 0x64c   :  { %3476 = vmatprep.subr.mxu1 %v1757_v43 }
 0x64d   :  { %3477 = vmatpush3.msra.mxu1 %v1757_v43 }
 0x64e   :  { %3478 = vmatprep.subr.mxu1 %v1756_v44 }
 0x64f   :  { %3479 = vmatpush3.msra.mxu1 %v1756_v44 }
 0x650   :  { %3480 = vmatprep.subr.mxu1 %v1755_v46 }
 0x651   :  { %3481 = vmatpush3.msra.mxu1 %v1755_v46 }
 0x652   :  { %3482 = vmatprep.subr.mxu1 %v1754_v47 }
 0x653   :  { %3483 = vmatpush3.msra.mxu1 %v1754_v47 }
 0x654   :  { %3484 = vmatprep.subr.mxu1 %v1753_v49 }
 0x655   :  { %3485 = vmatpush3.msra.mxu1 %v1753_v49 }
 0x656   :  { %3486 = vmatprep.subr.mxu1 %v1752_v50 }
 0x657   :  { %3487 = vmatpush3.msra.mxu1 %v1752_v50 }
 0x658   :  { %3488 = vmatprep.subr.mxu1 %v1751_v52 }
 0x659   :  { %3489 = vmatpush3.msra.mxu1 %v1751_v52 }
 0x65a   :  { %3490 = vmatprep.subr.mxu1 %v1750_v53 }
 0x65b   :  { %3491 = vmatpush3.msra.mxu1 %v1750_v53 }
 0x65c   :  { %3492 = vmatprep.subr.mxu1 %v1749_v55 }
 0x65d   :  { %3493 = vmatpush3.msra.mxu1 %v1749_v55 }
 0x65e   :  { %3494 = vmatprep.subr.mxu1 %v1748_v56 }
 0x65f   :  { %3495 = vmatpush3.msra.mxu1 %v1748_v56 }
 0x660   :  { %3496 = vmatprep.subr.mxu1 %v1747_v57 }
 0x661   :  { %3497 = vmatpush3.msra.mxu1 %v1747_v57 }
 0x662   :  { %3498 = vmatprep.subr.mxu1 %v1746_v61 }
 0x663   :  { %3499 = vmatpush3.msra.mxu1 %v1746_v61 }
 0x664   :  { %3500 = vmatprep.subr.mxu1 %v1745_v62 }
 0x665   :  { %3501 = vmatpush3.msra.mxu1 %v1745_v62 }
 0x666   :  { %3502 = vmatprep.subr.mxu1 %v1744_v21 }
 0x667   :  { %v3450_v22 = vpop.f32.mrf.mxu0  ;;  %3503 = vmatpush3.msra.mxu1 %v1744_v21 }
 0x668   :  { %3584 = vmatprep.subr.mxu1 %v3719_v0 }
 0x669   :  { %v1664_v23 = vpop.f32.mrf.mxu0 }
 0x66a   :  { %3504 = vmatprep.mubr.f32.mxu1 %v1664_v23 }
 0x66b   :  { %v3453_v24 = vpop.f32.mrf.mxu0  ;;  %3505 = vmatmul.mubr.f32.vlgmr.msra.gmra.mxu1 %v3450_v22 }
 0x66d   :  { %v1674_v17 = vpop.f32.mrf.mxu0 }
 0x66e   :  { %3507 = vmatprep.mubr.f32.mxu1 %v1674_v17 }
 0x66f   :  { %v3456_v25 = vpop.f32.mrf.mxu0  ;;  %3508 = vmatmul.mubr.f32.gmra.mxu1 %v3453_v24 }
 0x671   :  { %v1684_v19 = vpop.f32.mrf.mxu0 }
 0x672   :  { %3510 = vmatprep.mubr.f32.mxu1 %v1684_v19 }
 0x673   :  { %v3459_v26 = vpop.f32.mrf.mxu0  ;;  %3511 = vmatmul.mubr.f32.gmra.mxu1 %v3456_v25 }
 0x675   :  { %v1694_v13 = vpop.f32.mrf.mxu0 }
 0x676   :  { %3513 = vmatprep.mubr.f32.mxu1 %v1694_v13 }
 0x677   :  { %v3462_v15 = vpop.f32.mrf.mxu0  ;;  %3514 = vmatmul.mubr.f32.gmra.mxu1 %v3459_v26 }
 0x679   :  { %v1704_v10 = vpop.f32.mrf.mxu0 }
 0x67a   :  { %3516 = vmatprep.mubr.f32.mxu1 %v1704_v10 }
 0x67b   :  { %v3465_v11 = vpop.f32.mrf.mxu0  ;;  %3517 = vmatmul.mubr.f32.gmra.mxu1 %v3462_v15 }
 0x67d   :  { %v1714_v27 = vpop.f32.mrf.mxu0 }
 0x67e   :  { %3519 = vmatprep.mubr.f32.mxu1 %v1714_v27 }
 0x67f   :  { %v3468_v28 = vpop.f32.mrf.mxu0  ;;  %3520 = vmatmul.mubr.f32.gmra.mxu1 %v3465_v11 }
 0x681   :  { %v1724_v29 = vpop.f32.mrf.mxu0 }
 0x682   :  { %3522 = vmatprep.mubr.f32.mxu1 %v1724_v29 }
 0x683   :  { %v3471_v31 = vpop.f32.mrf.mxu0  ;;  %3523 = vmatmul.mubr.f32.gmra.mxu1 %v3468_v28 }
 0x685   :  { %v1734_v33 = vpop.f32.mrf.mxu0 }
 0x686   :  { %3525 = vmatprep.mubr.f32.mxu1 %v1734_v33 }
 0x687   :  { %3526 = vmatmul.mubr.f32.gmra.mxu1 %v3471_v31 }
 0x688   :  { %3616 = vmatprep.mubr.msk.f32.mxu1 %vm3720_vm0, %v3719_v0 }
 0x708   :  { %v1593_v2 = vpop.f32.mrf.mxu1 }
 0x709   :  { %v4153_v12 = vadd.f32 %v1593_v2, %v4073_v36  ;;  %v2191_v2 = vld [vmem:[#allocation2 + $0x4a8] sm:$0xff] }
 0x70a   :  { %v3415_v14 = vpop.f32.mrf.mxu1 }
 0x70b   :  { %v2190_v14 = vld [vmem:[#allocation2 + $0x4a0] sm:$0xff] }
 0x72b   :  { %v3506_v6 = vpop.f32.mrf.mxu1 }
 0x72c   :  { %v1840_v18 = vadd.f32 %v3506_v6, %v2385_v16  ;;  %v2188_v6 = vld [vmem:[#allocation2 + $0x490] sm:$0xff] }
 0x72d   :  { %v1834_v8 = vpop.f32.mrf.mxu1 }
 0x72e   :  { %v1835_v20 = vadd.f32 %v2385_v16, %v1834_v8  ;;  %v1914_v32 = vmax.f32 %v1840_v18, 0.0  ;;  %v2187_v18 = vld [vmem:[#allocation2 + $0x488] sm:$0xff] }
 0x72f   :  { %v3509_v63 = vpop.f32.mrf.mxu1 }
 0x730   :  { %v1913_v4 = vmax.f32 %v1835_v20, 0.0  ;;  %v1850_v37 = vadd.f32 %v3509_v63, %v2385_v16 }
 0x731   :  { %v1844_v38 = vpop.f32.mrf.mxu1 }
 0x732   :  { %v1845_v40 = vadd.f32 %v2385_v16, %v1844_v38  ;;  %3560 = vmatprep.mubr.f32.mxu0 %v1913_v4  ;;  %v1916_v43 = vmax.f32 %v1850_v37, 0.0 }
 0x733   :  { %v3512_v41 = vpop.f32.mrf.mxu1  ;;  %3561 = vmatmul.mubr.f32.vlgmr.msra.gmra.mxu0 %v1914_v32 }
 0x734   :  { %v1915_v36 = vmax.f32 %v1845_v40, 0.0  ;;  %v1860_v44 = vadd.f32 %v3512_v41, %v2385_v16  ;;  %3620 = vmatpush3.msra.mxu0 %v2201_v54 }
 0x735   :  { %v1854_v46 = vpop.f32.mrf.mxu1  ;;  %3621 = vmatprep.subr.mxu0 %v3719_v0 }
 0x736   :  { %v1855_v47 = vadd.f32 %v2385_v16, %v1854_v46  ;;  %3563 = vmatprep.mubr.f32.mxu0 %v1915_v36  ;;  %v1918_v52 = vmax.f32 %v1860_v44, 0.0  ;;  %3622 = vmatpush3.msra.mxu0 %v2200_v58 }
 0x737   :  { %v3515_v49 = vpop.f32.mrf.mxu1  ;;  %3564 = vmatmul.mubr.f32.gmra.mxu0 %v1916_v43  ;;  %3623 = vmatprep.subr.mxu0 %v3719_v0 }
 0x738   :  { %v1917_v50 = vmax.f32 %v1855_v47, 0.0  ;;  %v1870_v53 = vadd.f32 %v3515_v49, %v2385_v16  ;;  %3624 = vmatpush3.msra.mxu0 %v2199_v59  ;;  %v2387_v49 = vld [vmem:[%s4229_s4 + $0x5] ss:$0 sm:$0xff] }
 0x739   :  { %v1864_v55 = vpop.f32.mrf.mxu1  ;;  %3625 = vmatprep.subr.mxu0 %v3719_v0 }
 0x73a   :  { %v1865_v56 = vadd.f32 %v2385_v16, %v1864_v55  ;;  %3566 = vmatprep.mubr.f32.mxu0 %v1917_v50  ;;  %v1920_v62 = vmax.f32 %v1870_v53, 0.0  ;;  %3626 = vmatpush3.msra.mxu0 %v2198_v60  ;;  %v2186_v60 = vld [vmem:[#allocation2 + $0x480] sm:$0xff] }
 0x73b   :  { %v3518_v57 = vpop.f32.mrf.mxu1  ;;  %3567 = vmatmul.mubr.f32.gmra.mxu0 %v1918_v52  ;;  %3627 = vmatprep.subr.mxu0 %v3719_v0 }
 0x73c   :  { %v1919_v61 = vmax.f32 %v1865_v56, 0.0  ;;  %v1880_v21 = vadd.f32 %v3518_v57, %v2385_v16  ;;  %3628 = vmatpush3.msra.mxu0 %v2197_v42  ;;  %v2290_v42 = vld [vmem:[#allocation2 + $0x578] sm:$0xff] }
 0x73d   :  { %v1874_v22 = vpop.f32.mrf.mxu1  ;;  %3629 = vmatprep.subr.mxu0 %v3719_v0 }
 0x73e   :  { %v1875_v23 = vadd.f32 %v2385_v16, %v1874_v22  ;;  %3569 = vmatprep.mubr.f32.mxu0 %v1919_v61  ;;  %v1922_v25 = vmax.f32 %v1880_v21, 0.0  ;;  %3630 = vmatpush3.msra.mxu0 %v2196_v1  ;;  %v2289_v1 = vld [vmem:[#allocation2 + $0x570] sm:$0xff] }
 0x73f   :  { %v3521_v24 = vpop.f32.mrf.mxu1  ;;  %3570 = vmatmul.mubr.f32.gmra.mxu0 %v1920_v62  ;;  %3631 = vmatprep.subr.mxu0 %v3719_v0 }
 0x740   :  { %v1921_v17 = vmax.f32 %v1875_v23, 0.0  ;;  %v1890_v19 = vadd.f32 %v3521_v24, %v2385_v16  ;;  %3632 = vmatpush3.msra.mxu0 %v2195_v3  ;;  %v2288_v3 = vld [vmem:[#allocation2 + $0x568] sm:$0xff] }
 0x741   :  { %v1884_v26 = vpop.f32.mrf.mxu1  ;;  %3633 = vmatprep.subr.mxu0 %v3719_v0 }
 0x742   :  { %v1885_v13 = vadd.f32 %v2385_v16, %v1884_v26  ;;  %3572 = vmatprep.mubr.f32.mxu0 %v1921_v17  ;;  %v1924_v11 = vmax.f32 %v1890_v19, 0.0  ;;  %3634 = vmatpush3.msra.mxu0 %v2194_v5  ;;  %v2287_v5 = vld [vmem:[#allocation2 + $0x560] sm:$0xff] }
 0x743   :  { %v3524_v15 = vpop.f32.mrf.mxu1  ;;  %3573 = vmatmul.mubr.f32.gmra.mxu0 %v1922_v25  ;;  %3635 = vmatprep.subr.mxu0 %v3719_v0 }
 0x744   :  { %v1923_v10 = vmax.f32 %v1885_v13, 0.0  ;;  %v1900_v27 = vadd.f32 %v3524_v15, %v2385_v16  ;;  %3636 = vmatpush3.msra.mxu0 %v2193_v7  ;;  %v2285_v7 = vld [vmem:[#allocation2 + $0x550] sm:$0xff] }
 0x745   :  { %v1894_v28 = vpop.f32.mrf.mxu1  ;;  %3637 = vmatprep.subr.mxu0 %v3719_v0 }
 0x746   :  { %v1895_v29 = vadd.f32 %v2385_v16, %v1894_v28  ;;  %3575 = vmatprep.mubr.f32.mxu0 %v1923_v10  ;;  %v1926_v34 = vmax.f32 %v1900_v27, 0.0  ;;  %3638 = vmatpush3.msra.mxu0 %v2192_v9  ;;  %v2284_v9 = vld [vmem:[#allocation2 + $0x548] sm:$0xff] }
 0x747   :  { %v3527_v31 = vpop.f32.mrf.mxu1  ;;  %3576 = vmatmul.mubr.f32.gmra.mxu0 %v1924_v11  ;;  %3639 = vmatprep.subr.mxu0 %v3719_v0 }
 0x748   :  { %v1925_v33 = vmax.f32 %v1895_v29, 0.0  ;;  %v1910_v35 = vadd.f32 %v3527_v31, %v2385_v16  ;;  %3640 = vmatpush3.msra.mxu0 %v2191_v2  ;;  %v2283_v2 = vld [vmem:[#allocation2 + $0x540] sm:$0xff] }
 0x749   :  { %v1904_v39 = vpop.f32.mrf.mxu1  ;;  %3641 = vmatprep.subr.mxu0 %v3719_v0 }
 0x74a   :  { %v1905_v45 = vadd.f32 %v2385_v16, %v1904_v39  ;;  %3578 = vmatprep.mubr.f32.mxu0 %v1925_v33  ;;  %v1928_v51 = vmax.f32 %v1910_v35, 0.0  ;;  %v2189_v16 = vld [vmem:[#allocation2 + $0x498] sm:$0xff]  ;;  %3642 = vmatpush3.msra.mxu0 %v2190_v14 }
 0x74b   :  { %3579 = vmatmul.mubr.f32.gmra.mxu0 %v1926_v34  ;;  %3643 = vmatprep.subr.mxu0 %v3719_v0  ;;  %v2282_v14 = vld [vmem:[#allocation2 + $0x538] sm:$0xff] }
 0x74c   :  { %v1927_v48 = vmax.f32 %v1905_v45, 0.0  ;;  %3644 = vmatpush3.msra.mxu0 %v2189_v16  ;;  %v2281_v16 = vld [vmem:[#allocation2 + $0x530] sm:$0xff] }
 0x74d   :  { %3645 = vmatprep.subr.mxu0 %v3719_v0 }
 0x74e   :  { %3581 = vmatprep.mubr.f32.mxu0 %v1927_v48  ;;  %3646 = vmatpush3.msra.mxu0 %v2188_v6  ;;  %v2280_v6 = vld [vmem:[#allocation2 + $0x528] sm:$0xff] }
 0x74f   :  { %3582 = vmatmul.mubr.f32.gmra.mxu0 %v1928_v51  ;;  %3647 = vmatprep.subr.mxu0 %v3719_v0 }
 0x750   :  { %3651 = vmatprep.mubr.msk.f32.mxu0 %vm3720_vm0, %v3719_v0  ;;  %3648 = vmatpush3.msra.mxu0 %v2187_v18  ;;  %v2279_v18 = vld [vmem:[#allocation2 + $0x520] sm:$0xff] }
 0x751   :  { %3649 = vmatprep.subr.mxu0 %v3719_v0 }
 0x752   :  { %3650 = vmatpush3.msra.mxu0 %v2186_v60 }
 0x7f3   :  { %v4175_v8 = vpop.f32.mrf.mxu0 }
 0x7f4   :  { %v2026_v45 = vadd.f32 %v4175_v8, %v2387_v49  ;;  %v2278_v8 = vld [vmem:[#allocation2 + $0x518] sm:$0xff] }
 0x7f5   :  { %v4177_v20 = vpop.f32.mrf.mxu0 }
 0x7f6   :  { %v2021_v51 = vadd.f32 %v2387_v49, %v4177_v20  ;;  %v2100_v58 = vmax.f32 %v2026_v45, 0.0 }
 0x7f7   :  { %v3565_v63 = vpop.f32.mrf.mxu0 }
 0x7f8   :  { %v2036_v33 = vadd.f32 %v3565_v63, %v2387_v49  ;;  %v2099_v59 = vmax.f32 %v2021_v51, 0.0 }
 0x7f9   :  { %v2030_v4 = vpop.f32.mrf.mxu0 }
 0x7fa   :  { %v2031_v35 = vadd.f32 %v2387_v49, %v2030_v4  ;;  %v2102_v48 = vmax.f32 %v2036_v33, 0.0  ;;  %v2277_v4 = vld [vmem:[#allocation2 + $0x510] sm:$0xff] }
 0x7fb   :  { %v3568_v32 = vpop.f32.mrf.mxu0 }
 0x7fc   :  { %v2046_v27 = vadd.f32 %v3568_v32, %v2387_v49  ;;  %v2101_v54 = vmax.f32 %v2031_v35, 0.0  ;;  %v2276_v32 = vld [vmem:[#allocation2 + $0x508] sm:$0xff] }
 0x7fd   :  { %v2040_v37 = vpop.f32.mrf.mxu0 }
 0x7fe   :  { %v2041_v29 = vadd.f32 %v2387_v49, %v2040_v37  ;;  %v2104_v34 = vmax.f32 %v2046_v27, 0.0  ;;  %v2275_v37 = vld [vmem:[#allocation2 + $0x500] sm:$0xff] }
 0x7ff   :  { %v3571_v38 = vpop.f32.mrf.mxu0 }
 0x800   :  { %v2056_v13 = vadd.f32 %v3571_v38, %v2387_v49  ;;  %v2103_v39 = vmax.f32 %v2041_v29, 0.0 }
 0x801   :  { %v2050_v40 = vpop.f32.mrf.mxu0 }
 0x802   :  { %v2051_v10 = vadd.f32 %v2387_v49, %v2050_v40  ;;  %v2106_v28 = vmax.f32 %v2056_v13, 0.0 }
 0x803   :  { %v3574_v41 = vpop.f32.mrf.mxu0 }
 0x804   :  { %v2066_v17 = vadd.f32 %v3574_v41, %v2387_v49  ;;  %v2105_v31 = vmax.f32 %v2051_v10, 0.0 }
 0x805   :  { %v2060_v36 = vpop.f32.mrf.mxu0 }
 0x806   :  { %v2061_v19 = vadd.f32 %v2387_v49, %v2060_v36  ;;  %v2108_v15 = vmax.f32 %v2066_v17, 0.0 }
 0x807   :  { %v3577_v43 = vpop.f32.mrf.mxu0 }
 0x808   :  { %v2076_v21 = vadd.f32 %v3577_v43, %v2387_v49  ;;  %v2107_v11 = vmax.f32 %v2061_v19, 0.0  ;;  %v2389_v43 = vld [vmem:[%s4229_s4 + $0x7] ss:$0 sm:$0xff] }
 0x809   :  { %v2070_v44 = vpop.f32.mrf.mxu0 }
 0x80a   :  { %v2071_v23 = vadd.f32 %v2387_v49, %v2070_v44  ;;  %v2110_v25 = vmax.f32 %v2076_v21, 0.0 }
 0x80b   :  { %v3580_v46 = vpop.f32.mrf.mxu0 }
 0x80c   :  { %v2086_v55 = vadd.f32 %v3580_v46, %v2387_v49  ;;  %v2109_v26 = vmax.f32 %v2071_v23, 0.0 }
 0x80d   :  { %v2080_v47 = vpop.f32.mrf.mxu0 }
 0x80e   :  { %v2081_v61 = vadd.f32 %v2387_v49, %v2080_v47  ;;  %v2112_v22 = vmax.f32 %v2086_v55, 0.0 }
 0x80f   :  { %v3583_v50 = vpop.f32.mrf.mxu0 }
 0x810   :  { %v2096_v52 = vadd.f32 %v3583_v50, %v2387_v49  ;;  %v2111_v24 = vmax.f32 %v2081_v61, 0.0 }
 0x811   :  { %v2090_v53 = vpop.f32.mrf.mxu0 }
 0x812   :  { %v2114_v56 = vmax.f32 %v2096_v52, 0.0  ;;  %v2091_v57 = vadd.f32 %v2387_v49, %v2090_v53 }
 0x814   :  { %v2113_v62 = vmax.f32 %v2091_v57, 0.0  ;;  %3585 = vmatpush3.msra.mxu1 %v2114_v56 }
 0x815   :  { %3586 = vmatprep.subr.mxu1 %v3719_v0 }
 0x816   :  { %3587 = vmatpush3.msra.mxu1 %v2113_v62 }
 0x817   :  { %3588 = vmatprep.subr.mxu1 %v3719_v0 }
 0x818   :  { %3589 = vmatpush3.msra.mxu1 %v2112_v22 }
 0x819   :  { %3590 = vmatprep.subr.mxu1 %v3719_v0 }
 0x81a   :  { %3591 = vmatpush3.msra.mxu1 %v2111_v24 }
 0x81b   :  { %3592 = vmatprep.subr.mxu1 %v3719_v0 }
 0x81c   :  { %3593 = vmatpush3.msra.mxu1 %v2110_v25 }
 0x81d   :  { %3594 = vmatprep.subr.mxu1 %v3719_v0 }
 0x81e   :  { %3595 = vmatpush3.msra.mxu1 %v2109_v26 }
 0x81f   :  { %3596 = vmatprep.subr.mxu1 %v3719_v0 }
 0x820   :  { %3597 = vmatpush3.msra.mxu1 %v2108_v15 }
 0x821   :  { %3598 = vmatprep.subr.mxu1 %v3719_v0 }
 0x822   :  { %3599 = vmatpush3.msra.mxu1 %v2107_v11 }
 0x823   :  { %3600 = vmatprep.subr.mxu1 %v3719_v0 }
 0x824   :  { %3601 = vmatpush3.msra.mxu1 %v2106_v28 }
 0x825   :  { %3602 = vmatprep.subr.mxu1 %v3719_v0 }
 0x826   :  { %3603 = vmatpush3.msra.mxu1 %v2105_v31 }
 0x827   :  { %3604 = vmatprep.subr.mxu1 %v3719_v0 }
 0x828   :  { %3605 = vmatpush3.msra.mxu1 %v2104_v34 }
 0x829   :  { %3606 = vmatprep.subr.mxu1 %v3719_v0 }
 0x82a   :  { %3607 = vmatpush3.msra.mxu1 %v2103_v39 }
 0x82b   :  { %3608 = vmatprep.subr.mxu1 %v3719_v0 }
 0x82c   :  { %3609 = vmatpush3.msra.mxu1 %v2102_v48 }
 0x82d   :  { %3610 = vmatprep.subr.mxu1 %v3719_v0 }
 0x82e   :  { %3611 = vmatpush3.msra.mxu1 %v2101_v54 }
 0x82f   :  { %3612 = vmatprep.subr.mxu1 %v3719_v0 }
 0x830   :  { %3613 = vmatpush3.msra.mxu1 %v2100_v58 }
 0x831   :  { %3614 = vmatprep.subr.mxu1 %v3719_v0 }
 0x832   :  { %3615 = vmatpush3.msra.mxu1 %v2099_v59 }
 0x833   :  { %3617 = vmatmul.mubr.f32.vlgmr.msra.gmra.mxu1 %v3879_v30  ;;  %3654 = vmatprep.subr.mxu1 %v3719_v0  ;;  %v2286_v30 = vld [vmem:[#allocation2 + $0x558] sm:$0xff] }
 0x834   :  { %3686 = vmatprep.mubr.msk.f32.mxu1 %vm3720_vm0, %v3719_v0  ;;  %3655 = vmatpush3.msra.mxu1 %v2290_v42 }
 0x835   :  { %3656 = vmatprep.subr.mxu1 %v3719_v0 }
 0x836   :  { %3657 = vmatpush3.msra.mxu1 %v2289_v1 }
 0x837   :  { %3658 = vmatprep.subr.mxu1 %v3719_v0 }
 0x838   :  { %3659 = vmatpush3.msra.mxu1 %v2288_v3 }
 0x839   :  { %3660 = vmatprep.subr.mxu1 %v3719_v0 }
 0x83a   :  { %3661 = vmatpush3.msra.mxu1 %v2287_v5 }
 0x83b   :  { %3662 = vmatprep.subr.mxu1 %v3719_v0 }
 0x83c   :  { %3663 = vmatpush3.msra.mxu1 %v2286_v30 }
 0x83d   :  { %3664 = vmatprep.subr.mxu1 %v3719_v0 }
 0x83e   :  { %3665 = vmatpush3.msra.mxu1 %v2285_v7 }
 0x83f   :  { %3666 = vmatprep.subr.mxu1 %v3719_v0 }
 0x840   :  { %3667 = vmatpush3.msra.mxu1 %v2284_v9 }
 0x841   :  { %3668 = vmatprep.subr.mxu1 %v3719_v0 }
 0x842   :  { %3669 = vmatpush3.msra.mxu1 %v2283_v2 }
 0x843   :  { %3670 = vmatprep.subr.mxu1 %v3719_v0 }
 0x844   :  { %3671 = vmatpush3.msra.mxu1 %v2282_v14 }
 0x845   :  { %3672 = vmatprep.subr.mxu1 %v3719_v0 }
 0x846   :  { %3673 = vmatpush3.msra.mxu1 %v2281_v16 }
 0x847   :  { %3674 = vmatprep.subr.mxu1 %v3719_v0 }
 0x848   :  { %3675 = vmatpush3.msra.mxu1 %v2280_v6 }
 0x849   :  { %3676 = vmatprep.subr.mxu1 %v3719_v0 }
 0x84a   :  { %3677 = vmatpush3.msra.mxu1 %v2279_v18 }
 0x84b   :  { %3678 = vmatprep.subr.mxu1 %v3719_v0 }
 0x84c   :  { %3679 = vmatpush3.msra.mxu1 %v2278_v8 }
 0x84d   :  { %3680 = vmatprep.subr.mxu1 %v3719_v0 }
 0x84e   :  { %3681 = vmatpush3.msra.mxu1 %v2277_v4 }
 0x84f   :  { %3682 = vmatprep.subr.mxu1 %v3719_v0 }
 0x850   :  { %3683 = vmatpush3.msra.mxu1 %v2276_v32 }
 0x851   :  { %3684 = vmatprep.subr.mxu1 %v3719_v0 }
 0x852   :  { %3685 = vmatpush3.msra.mxu1 %v2275_v37 }
 0x8f3   :  { %v2181_v20 = vpop.f32.mrf.mxu1 }
 0x8f4   :  { %3652 = vmatmul.mubr.f32.vlgmr.msra.gmra.mxu0 %v2181_v20 }
 0x8f5   :  { %v3618_v63 = vpop.f32.mrf.mxu1 }
 0x9b4   :  { %v2268_v38 = vpop.f32.mrf.mxu0 }
 0x9b5   :  { %v2272_v40 = vadd.f32 %v2268_v38, %v4153_v12 }
 0x9b6   :  { %v3653_v41 = vpop.f32.mrf.mxu0 }
 0x9b7   :  { %v2273_v36 = vmax.f32 %v2272_v40, 0.0 }
 0x9b9   :  { %3687 = vmatmul.mubr.f32.vlgmr.msra.gmra.mxu1 %v2273_v36 }
 0xa79   :  { %v2365_v44 = vpop.f32.mrf.mxu1 }
 0xa7a   :  { %v2366_v46 = vadd.f32 %v2389_v43, %v2365_v44 }
 0xa7b   :  { %v3688_v47 = vpop.f32.mrf.mxu1 }
 0xa7c   :  { %2369 = vst [vmem:[%s4230_s5] sm:$0xff] %v2366_v46 }
 0xa7d   :  { %2374 = vsyncpa [#allocation3], 1 }

</bundles_post_ra>
